<compile_context>
chip_gen: v7x
topology: tpu7x:2x2x1
jax: 0.10.0
libtpu: 0.0.40
codegen_flags: <defaults>
</compile_context>

<pallas_src>
import functools

import jax
import jax.numpy as jnp
from jax.experimental import pallas as pl
from jax.experimental.pallas import tpu as pltpu


def _gsr_kernel(a_ref, slab_ref, out_ref, *, lr_dim, hr_dim, block_b):
    """Fused GSR hot path for one block of `block_b` problems.

    a_ref    : (hr, lr)          pre-summed / row-sliced weights (shared, resident)
    slab_ref : (Bb, lr+hr, hr)   [ U^T (lane-zero-padded) ; X[:, :hr] (sublane-zero-padded) ]
    out_ref  : (Bb, 2, hr, hr)   [:,0] = adj, [:,1] = |adj @ adj^T| with unit diagonal
    """
    L, H, Bb = lr_dim, hr_dim, block_b
    bdims = ((0,), (0,))

    a = a_ref[...]                                     # (H, L)
    ut = slab_ref[:, :L, :]                            # (Bb, L, H)  U^T, cols L:H are zero
    xs = slab_ref[:, L:, :]                            # (Bb, H, H)  X[:, :H], rows L:H are zero

    # m = U^T @ X[:, :H]   (the zero padding makes the K=H contraction exact)
    m = jax.lax.dot_general(ut, xs, (((2,), (1,)), bdims),
                            preferred_element_type=jnp.float32)    # (Bb, L, H)

    # f_d = a @ m = (W @ [I;I])[:H] @ U^T @ X[:, :H]
    a_b = jnp.broadcast_to(a[None], (Bb, H, L))
    fd = jax.lax.dot_general(a_b, m, (((2,), (1,)), bdims),
                             preferred_element_type=jnp.float32)   # (Bb, H, H)

    # leaky_relu(0.2) -> fill_diagonal_(1) -> clamp(0, 1), fused select chain.
    rows = jax.lax.broadcasted_iota(jnp.int32, (H, H), 0)
    cols = jax.lax.broadcasted_iota(jnp.int32, (H, H), 1)
    diag = (rows == cols)[None]                        # (1, H, H)
    fd = jnp.where(fd >= 0, fd, 0.2 * fd)
    adj = jnp.where(diag, 1.0, jnp.clip(fd, 0.0, 1.0))

    # X = adj @ adj^T is symmetric by construction -> (X + X^T)/2 dropped.
    x2 = jax.lax.dot_general(adj, adj, (((2,), (2,)), bdims),
                             preferred_element_type=jnp.float32)   # (Bb, H, H)

    out_ref[:, 0, :, :] = adj
    out_ref[:, 1, :, :] = jnp.where(diag, 1.0, jnp.abs(x2))


def gsr_layer_forward_batched(A, X, weights, hr_dim, *, block_b=8):
    """Batched GSRLayer.forward.

    A       : (B, lr, lr) symmetric low-res adjacencies
    X       : (B, lr, F)  node features, F >= hr_dim
    weights : (2*lr, 2*lr)
    returns (adj, abs_X): both (B, hr, hr), float32.
    """
    A = jnp.asarray(A, jnp.float32)
    X = jnp.asarray(X, jnp.float32)
    W = jnp.asarray(weights, jnp.float32)
    B, L, _ = A.shape
    H = int(hr_dim)
    if not (L <= H <= 2 * L):
        raise ValueError("expected lr_dim <= hr_dim <= 2*lr_dim")
    if X.shape[-1] < H:
        raise ValueError("X must have at least hr_dim feature columns")

    # TODO(synk): eigendecomposition has no Pallas equivalent (XLA glue).
    _, U = jnp.linalg.eigh(A, UPLO='U', symmetrize_input=False)          # (B, L, L)

    # Wrapper-side layout plumbing (fuses into XLA glue; keeps the kernel free
    # of sub-tile lane slices and transposes).
    a_hr = (W[:, :L] + W[:, L:])[:H, :]                                  # (H, L) == (W @ [I;I])[:H]
    ut_pad = jnp.pad(jnp.swapaxes(U, -1, -2),
                     ((0, 0), (0, 0), (0, H - L)))                       # (B, L, H)
    xs_pad = jnp.pad(X[:, :, :H], ((0, 0), (0, H - L), (0, 0)))          # (B, H, H)
    slab = jnp.concatenate([ut_pad, xs_pad], axis=1)                     # (B, L+H, H)

    # Pad the batch to a multiple of the per-step block.
    bb = max(1, min(int(block_b), B))
    Bp = ((B + bb - 1) // bb) * bb
    if Bp != B:
        slab = jnp.pad(slab, ((0, Bp - B), (0, 0), (0, 0)))

    flops = Bp * 2 * (L * H * H + H * L * H + H * H * H)
    bytes_accessed = 4 * (H * L + Bp * (L + H) * H + Bp * 2 * H * H)

    kernel = functools.partial(_gsr_kernel, lr_dim=L, hr_dim=H, block_b=bb)
    out = pl.pallas_call(
        kernel,
        grid=(Bp // bb,),
        in_specs=[
            pl.BlockSpec((H, L), lambda i: (0, 0)),            # weights: resident in VMEM
            pl.BlockSpec((bb, L + H, H), lambda i: (i, 0, 0)),  # packed per-problem slab
        ],
        out_specs=pl.BlockSpec((bb, 2, H, H), lambda i: (i, 0, 0, 0)),
        out_shape=jax.ShapeDtypeStruct((Bp, 2, H, H), jnp.float32),
        compiler_params=pltpu.CompilerParams(
            dimension_semantics=("parallel",)),
        cost_estimate=pl.CostEstimate(
            flops=flops, bytes_accessed=bytes_accessed, transcendentals=0),
    )(a_hr, slab)

    return out[:B, 0], out[:B, 1]


def gsr_layer_forward(A, X, weights, hr_dim):
    """Single-problem GSRLayer.forward (matches the torch module signature)."""
    adj, x_abs = gsr_layer_forward_batched(A[None], X[None], weights, hr_dim,
                                           block_b=1)
    return adj[0], x_abs[0]


def weight_variable_glorot(key, dim):
    """Glorot-uniform init matching weight_variable_glorot(dim) -> (dim, dim)."""
    init_range = jnp.sqrt(6.0 / (dim + dim))
    return jax.random.uniform(key, (dim, dim), dtype=jnp.float32,
                              minval=-init_range, maxval=init_range)


def gsr_reference_batched(A, X, weights, hr_dim):
    """Pure-JAX mirror of the torch GSRLayer.forward (correctness check)."""
    hi = jax.lax.Precision.HIGHEST
    L = A.shape[-1]
    H = hr_dim
    _, U = jnp.linalg.eigh(A, UPLO='U', symmetrize_input=False)
    eye = jnp.eye(L, dtype=jnp.float32)
    s_d = jnp.concatenate([eye, eye], axis=0)                            # (2L, L)
    a = jnp.matmul(weights, s_d, precision=hi)                           # (2L, L)
    b = jnp.einsum('hl,bkl->bhk', a, U, precision=hi)                    # a @ U^T
    fd = jnp.einsum('bhk,bkf->bhf', b, X, precision=hi)[:, :H, :H]
    fd = jnp.where(fd >= 0, fd, 0.2 * fd)
    diag = jnp.eye(H, dtype=bool)
    fd = jnp.where(diag, 1.0, fd)
    adj = jnp.clip(fd, 0.0, 1.0)
    x2 = jnp.einsum('bik,bjk->bij', adj, adj, precision=hi)
    x2 = (x2 + jnp.swapaxes(x2, -1, -2)) * 0.5
    x2 = jnp.where(diag, 1.0, x2)
    return adj, jnp.abs(x2)


if __name__ == "__main__":
    lr_dim, hr_dim = 16, 32          # standard AGSR-Net configuration: hr = 2 * lr
    batch = 16

    key = jax.random.PRNGKey(0)
    k_a, k_x, k_w = jax.random.split(key, 3)

    a_raw = jax.random.uniform(k_a, (batch, lr_dim, lr_dim), dtype=jnp.float32)
    A = (a_raw + jnp.swapaxes(a_raw, -1, -2)) * 0.5       # symmetric adjacencies in [0, 1]
    X = jax.random.normal(k_x, (batch, lr_dim, hr_dim), dtype=jnp.float32)
    W = weight_variable_glorot(k_w, 2 * lr_dim)

    fwd = jax.jit(functools.partial(gsr_layer_forward_batched,
                                    hr_dim=hr_dim, block_b=8))
    adj, x_abs = fwd(A, X, W)
    jax.block_until_ready((adj, x_abs))
    assert adj.shape == (batch, hr_dim, hr_dim)
    assert x_abs.shape == (batch, hr_dim, hr_dim)

    # Correctness vs. a pure-JAX mirror of the torch module.
    ref_adj, ref_x = gsr_reference_batched(A, X, W, hr_dim)
    assert jnp.allclose(adj, ref_adj, rtol=1e-2, atol=1e-2)
    assert jnp.allclose(x_abs, ref_x, rtol=1e-2, atol=1e-2)

    # Single-problem path (module-equivalent signature).
    adj1, x1 = gsr_layer_forward(A[0], X[0], W, hr_dim)
    jax.block_until_ready((adj1, x1))
    assert adj1.shape == (hr_dim, hr_dim) and x1.shape == (hr_dim, hr_dim)

    print("KERNEL_OK")
</pallas_src>

<mosaic_0001>
module attributes {stable_mosaic.version = 11 : i64} {
  func.func @_gsr_kernel(%arg0: i32, %arg1: memref<32x16xf32, #tpu.memory_space<vmem>>, %arg2: memref<8x48x32xf32, #tpu.memory_space<vmem>>, %arg3: memref<8x2x32x32xf32, #tpu.memory_space<vmem>>) attributes {dimension_semantics = [#tpu.dimension_semantics<parallel>], iteration_bounds = array<i64: 2>, scalar_prefetch = 0 : i64, scratch_operands = 0 : i64, tpu.core_type = #tpu.core_type<tc>, window_params = [{pipeline_mode = #tpu.pipeline_mode<synchronous>, transform_indices = @transform_0, window_bounds = array<i64: 32, 16>}, {transform_indices = @transform_1, window_bounds = array<i64: 8, 48, 32>}, {transform_indices = @transform_2, window_bounds = array<i64: 8, 2, 32, 32>}]} {
    %c0 = arith.constant 0 : index
    %c0_0 = arith.constant 0 : index
    %0 = vector.load %arg1[%c0, %c0_0] : memref<32x16xf32, #tpu.memory_space<vmem>>, vector<32x16xf32>
    %c0_1 = arith.constant 0 : index
    %c0_2 = arith.constant 0 : index
    %c0_3 = arith.constant 0 : index
    %1 = vector.load %arg2[%c0_1, %c0_2, %c0_3] : memref<8x48x32xf32, #tpu.memory_space<vmem>>, vector<8x16x32xf32>
    %c0_4 = arith.constant 0 : index
    %c16 = arith.constant 16 : index
    %c0_5 = arith.constant 0 : index
    %2 = vector.load %arg2[%c0_4, %c16, %c0_5] : memref<8x48x32xf32, #tpu.memory_space<vmem>>, vector<8x32x32xf32>
    %cst = arith.constant dense<0.000000e+00> : vector<8x16x32xf32>
    %3 = tpu.matmul %1, %2, %cst {dimension_numbers = #tpu.dot_dimension_numbers<[2], [1], [1], [2], [0, 0, 0, 1, 1, 2], [0], [0]>} : vector<8x16x32xf32>, vector<8x32x32xf32>, vector<8x16x32xf32> -> vector<8x16x32xf32>
    %4 = vector.shape_cast %0 : vector<32x16xf32> to vector<1x32x16xf32>
    %5 = vector.shape_cast %4 : vector<1x32x16xf32> to vector<1x32x16xf32>
    %6 = vector.broadcast %5 : vector<1x32x16xf32> to vector<8x32x16xf32>
    %cst_6 = arith.constant dense<0.000000e+00> : vector<8x32x32xf32>
    %7 = tpu.matmul %6, %3, %cst_6 {dimension_numbers = #tpu.dot_dimension_numbers<[2], [1], [1], [2], [0, 0, 0, 1, 1, 2], [0], [0]>} : vector<8x32x16xf32>, vector<8x16x32xf32>, vector<8x32x32xf32> -> vector<8x32x32xf32>
    %8 = tpu.iota {dimensions = array<i32: 0>} : vector<32x32xi32>
    %9 = tpu.iota {dimensions = array<i32: 1>} : vector<32x32xi32>
    %10 = arith.cmpi eq, %8, %9 : vector<32x32xi32>
    %11 = vector.shape_cast %10 : vector<32x32xi1> to vector<1x32x32xi1>
    %cst_7 = arith.constant 0.000000e+00 : f32
    %12 = vector.broadcast %cst_7 : f32 to vector<8x32x32xf32>
    %13 = arith.cmpf oge, %7, %12 : vector<8x32x32xf32>
    %cst_8 = arith.constant 2.000000e-01 : f32
    %14 = vector.broadcast %cst_8 : f32 to vector<8x32x32xf32>
    %15 = arith.mulf %14, %7 : vector<8x32x32xf32>
    %16 = arith.select %13, %7, %15 : vector<8x32x32xi1>, vector<8x32x32xf32>
    %cst_9 = arith.constant 0.000000e+00 : f32
    %cst_10 = arith.constant 1.000000e+00 : f32
    %17 = vector.broadcast %cst_9 : f32 to vector<8x32x32xf32>
    %18 = arith.maximumf %17, %16 : vector<8x32x32xf32>
    %19 = vector.broadcast %cst_10 : f32 to vector<8x32x32xf32>
    %20 = arith.minimumf %19, %18 : vector<8x32x32xf32>
    %cst_11 = arith.constant 1.000000e+00 : f32
    %21 = vector.shape_cast %11 : vector<1x32x32xi1> to vector<1x32x32xi1>
    %22 = vector.broadcast %21 : vector<1x32x32xi1> to vector<8x32x32xi1>
    %23 = vector.broadcast %cst_11 : f32 to vector<8x32x32xf32>
    %24 = arith.select %22, %23, %20 : vector<8x32x32xi1>, vector<8x32x32xf32>
    %cst_12 = arith.constant dense<0.000000e+00> : vector<8x32x32xf32>
    %25 = tpu.matmul %24, %24, %cst_12 {dimension_numbers = #tpu.dot_dimension_numbers<[2], [2], [1], [1], [0, 0, 0, 1, 1, 1], [0], [0]>} : vector<8x32x32xf32>, vector<8x32x32xf32>, vector<8x32x32xf32> -> vector<8x32x32xf32>
    %c0_13 = arith.constant 0 : index
    %c0_14 = arith.constant 0 : index
    %c0_15 = arith.constant 0 : index
    %c0_16 = arith.constant 0 : index
    %26 = vector.load %arg3[%c0_13, %c0_14, %c0_15, %c0_16] : memref<8x2x32x32xf32, #tpu.memory_space<vmem>>, vector<8x1x32x32xf32>
    %27 = vector.shape_cast %26 : vector<8x1x32x32xf32> to vector<8x32x32xf32>
    %28 = vector.shape_cast %24 : vector<8x32x32xf32> to vector<8x1x32x32xf32>
    tpu.vector_store %arg3[%c0_13, %c0_14, %c0_15, %c0_16], %28 {strides = array<i32>} : memref<8x2x32x32xf32, #tpu.memory_space<vmem>>, vector<8x1x32x32xf32>,
    %29 = math.absf %25 : vector<8x32x32xf32>
    %cst_17 = arith.constant 1.000000e+00 : f32
    %30 = vector.shape_cast %11 : vector<1x32x32xi1> to vector<1x32x32xi1>
    %31 = vector.broadcast %30 : vector<1x32x32xi1> to vector<8x32x32xi1>
    %32 = vector.broadcast %cst_17 : f32 to vector<8x32x32xf32>
    %33 = arith.select %31, %32, %29 : vector<8x32x32xi1>, vector<8x32x32xf32>
    %c0_18 = arith.constant 0 : index
    %c1 = arith.constant 1 : index
    %c0_19 = arith.constant 0 : index
    %c0_20 = arith.constant 0 : index
    %34 = vector.load %arg3[%c0_18, %c1, %c0_19, %c0_20] : memref<8x2x32x32xf32, #tpu.memory_space<vmem>>, vector<8x1x32x32xf32>
    %35 = vector.shape_cast %34 : vector<8x1x32x32xf32> to vector<8x32x32xf32>
    %36 = vector.shape_cast %33 : vector<8x32x32xf32> to vector<8x1x32x32xf32>
    tpu.vector_store %arg3[%c0_18, %c1, %c0_19, %c0_20], %36 {strides = array<i32>} : memref<8x2x32x32xf32, #tpu.memory_space<vmem>>, vector<8x1x32x32xf32>,
    return
  }
  func.func @transform_0(%arg0: i32) -> (i32, i32) {
    %c0_i32 = arith.constant 0 : i32
    %c0_i32_0 = arith.constant 0 : i32
    %c0_i32_1 = arith.constant 0 : i32
    return %c0_i32, %c0_i32_0 : i32, i32
  }
  func.func @transform_1(%arg0: i32) -> (i32, i32, i32) {
    %c0_i32 = arith.constant 0 : i32
    %c0_i32_0 = arith.constant 0 : i32
    %c0_i32_1 = arith.constant 0 : i32
    return %arg0, %c0_i32, %c0_i32_0 : i32, i32, i32
  }
  func.func @transform_2(%arg0: i32) -> (i32, i32, i32, i32) {
    %c0_i32 = arith.constant 0 : i32
    %c0_i32_0 = arith.constant 0 : i32
    %c0_i32_1 = arith.constant 0 : i32
    %c0_i32_2 = arith.constant 0 : i32
    return %arg0, %c0_i32, %c0_i32_0, %c0_i32_1 : i32, i32, i32, i32
  }
}

</mosaic_0001>

<bundles_post_ra>
// kernel: custom-call.2
= control target key start
LH: loop header
LB: loop body
LE: loop exit
PB: predicated region body
PF: predicated region fallthrough
CT: control target
= control target key end

     0   :  { %s1662_s30 = smov 0   ;;  %s1664_s10 = smov 0   ;;  %s1971_s0 = inlined_call_operand.vmem [shape: f32[16,8,8], index: 0, kind: input, shape index: {}]   ;;  %s1972_s1 = inlined_call_operand.vmem [shape: f32[16,8,8], index: 1, kind: input, shape index: {}]   ;;  %s1973_s2 = inlined_call_operand.vmem [shape: f32[16,8,8], index: 2, kind: input, shape index: {}]   ;;  %s1974_s3 = inlined_call_operand.vmem [shape: f32[16,8,8], index: 3, kind: input, shape index: {}]   ;;  %s1975_s4 = inlined_call_operand.vmem [shape: f32[16,8], index: 4, kind: output, shape index: {0}]   ;;  %s1976_s5 = inlined_call_operand.vmem [shape: f32[16,8], index: 5, kind: output, shape index: {1}]   ;;  %s1977_s6 = inlined_call_operand.vmem [shape: f32[16,8,8], index: 6, kind: output, shape index: {2}]   ;;  %s1978_s7 = inlined_call_operand.vmem [shape: f32[16,8,8], index: 7, kind: output, shape index: {3}]   ;;  %s1979_s8 = inlined_call_operand.vmem [shape: f32[16,8,8], index: 8, kind: output, shape index: {4}]   ;;  %s1980_s9 = inlined_call_operand.vmem [shape: f32[16,8,8], index: 9, kind: output, shape index: {5}]  }
   0x1   :  { %s1666_s11 = smov 0  }
   0x2 LB: > { %s1678_s12 = sadd.s32 4294967295, %s1599_s11   ;;  %s1681_s13 = sadd.s32 1, %s1599_s11   ;;  %s1599_s11 = sphi %s1666_s11, %s1989_s11   ;;  %s1595_s10 = sphi %s1664_s10, %s1988_s10   ;;  %s1591_s30 = sphi %s1662_s30, %s1987_s30  }
   0x3   : > { %s20_s14 = sshrl.u32 %s1599_s11, 3  ;;  %s21_s15 = sshrl.u32 %s1681_s13, 3 }
   0x4   : > { %s22_s16 = ssub.s32 %s20_s14, %s21_s15  ;;  %s25_s17 = sadd.s32 1, %s1595_s10 }
   0x5   : > { %p23_p0 = scmp.eq.s32.totalorder %s22_s16, 0  ;;  %p35_p1 = scmp.ne.s32.totalorder %s1595_s10, %s1591_s30 }
   0x6   : > { %p36_p2 = scmp.eq.s32.totalorder %s1678_s12, 15  ;;  %p1460_p4 = scmp.ge.s32.totalorder %s1599_s11, 16 }
   0x7   : > { %s1690_s18 = scalar_select %p23_p0, %s1595_s10, %s25_s17  }
   0x8   : > { %p1692_p3 = por %p36_p2, %p35_p1  ;;  %86 = sbr.rel (%p1460_p4) target bundleno = 17 (0x11), region = 16 }
   0x9   : > { %1981 = sst [smem:[#allocation23_spill]] %s1690_s18  ;;  %s88_s20 = sand.u32 (!%p1460_p4), 1, %s1599_s11  }
   0xa   : > { %s1462_s21 = sshll.u32 (!%p1460_p4), %s1599_s11, 3  ;;  %s1461_s22 = sshll.u32 (!%p1460_p4), %s88_s20, 3 }
   0xb   : > { %s92_s25 = scalar_lea.vmem (!%p1460_p4), %s1971_s0, %s1462_s21  ;;  %s90_s26 = scalar_lea.vmem (!%p1460_p4), [#allocation0], %s1461_s22 }
   0xc   : > { %v120_v0 = vld [vmem:[%s92_s25] sm:$0xff] (!%p1460_p4)  ;;  %s130_s29 = scalar_lea.vmem (!%p1460_p4), %s1972_s1, %s1462_s21  ;;  %s168_s16 = scalar_lea.vmem (!%p1460_p4), %s1973_s2, %s1462_s21 }
   0xd   : > { %121 = vst [vmem:[%s90_s26] sm:$0xff] (!%p1460_p4), %v120_v0  ;;  %v158_v1 = vld [vmem:[%s130_s29] sm:$0xff] (!%p1460_p4)  ;;  %s128_s17 = scalar_lea.vmem (!%p1460_p4), [#allocation1], %s1461_s22  ;;  %s206_s23 = scalar_lea.vmem (!%p1460_p4), %s1974_s3, %s1462_s21 }
   0xe   : > { %159 = vst [vmem:[%s128_s17] sm:$0xff] (!%p1460_p4), %v158_v1  ;;  %v196_v2 = vld [vmem:[%s168_s16] sm:$0xff] (!%p1460_p4)  ;;  %s166_s24 = scalar_lea.vmem (!%p1460_p4), [#allocation2], %s1461_s22  ;;  %s204_s25 = scalar_lea.vmem (!%p1460_p4), [#allocation3], %s1461_s22 }
   0xf   : > { %197 = vst [vmem:[%s166_s24] sm:$0xff] %v196_v2  ;;  %v234_v3 = vld [vmem:[%s206_s23] sm:$0xff] }
  0x10   : > { %235 = vst [vmem:[%s204_s25] sm:$0xff] %v234_v3 }
  0x11 PF: > { %p1469_p5 = scmp.ge.s32.totalorder %s1599_s11, 1  ;;  %p240_p6 = scmp.lt.s32.totalorder %s1599_s11, 17 }
  0x13   : > { %p241_p7 = pnand %p1469_p5, %p240_p6 }
  0x15   : > { %244 = sbr.rel (%p241_p7) target bundleno = 984 (0x3d8), region = 156 }
  0x1c   : > { %s247_s26 = sand.u32 1, %s1678_s12   ;;  %s281_s27 = sand.u32 1, %s1591_s30   ;;  %v325_v4 = vlaneseq  ;;  %v1609_v11 = vmov 0.0  }
  0x1d   : > { %s1470_s28 = sshll.u32 %s247_s26, 3  ;;  %s1715_s18 = sshll.u32 %s281_s27, 3 }
  0x1e   : > { %v1717_v5 = vand.u32 127, %v325_v4  ;;  %v1719_v6 = vshrl.u32 %v325_v4, 7  ;;  %s249_s21 = scalar_lea.vmem [#allocation0], %s1470_s28  ;;  %s253_s22 = scalar_lea.vmem [#allocation1], %s1470_s28 }
  0x1f   : > { %v309_v7 = vld [vmem:[%s249_s21] sm:$0xff]  ;;  %v312_v8 = vld [vmem:[%s253_s22] sm:$0xff]  ;;  %s257_s29 = scalar_lea.vmem [#allocation2], %s1470_s28  ;;  %s261_s11 = scalar_lea.vmem [#allocation3], %s1470_s28 }
  0x20   : > { %v315_v9 = vld [vmem:[%s257_s29] sm:$0xff]  ;;  %v318_v10 = vld [vmem:[%s261_s11] sm:$0xff]  ;;  %s1721_s14 = scalar_lea.vmem [#allocation6], %s1470_s28  ;;  %s1724_s30 = scalar_lea.vmem [#allocation7], %s1470_s28  ;;  %v327_v5 = vmov %v1717_v5  ;;  %v330_v6 = vmov %v1719_v6  ;;  %vm1349_vm2 = vcmp.lt.s32.totalorder %v1717_v5, 8 }
  0x21   : > { %320 = vst [vmem:[%s1721_s14] sm:$0xff] %v1609_v11  ;;  %321 = vst [vmem:[%s1724_s30] sm:$0xff] %v1609_v11  ;;  %s308_s15 = smov [#allocation10]  ;;  %s311_s16 = smov [#allocation11]  ;;  %v340_v5 = vmov %v1717_v5  ;;  %v343_v6 = vmov %v1719_v6  ;;  %vm334_vm0 = vcmp.eq.s32.totalorder %v330_v6, %v327_v5 }
  0x22   : > { %s1727_s17 = scalar_lea.vmem [#allocation8], %s1470_s28  ;;  %s1730_s20 = scalar_lea.vmem [#allocation9], %s1470_s28  ;;  %310 = vst [vmem:[%s308_s15] sm:$0xff] %v309_v7  ;;  %313 = vst [vmem:[%s311_s16] sm:$0xff] %v312_v8  ;;  %vm347_vm1 = vcmp.eq.s32.totalorder %v343_v6, %v340_v5  ;;  %v1341_v5 = vmov %v1717_v5  ;;  %v1344_v6 = vmov %v1719_v6 }
  0x23   : > { %322 = vst [vmem:[%s1727_s17] sm:$0xff] %v1609_v11  ;;  %323 = vst [vmem:[%s1730_s20] sm:$0xff] %v1609_v11  ;;  %s314_s23 = smov [#allocation12]  ;;  %s317_s24 = smov [#allocation13]  ;;  %vm1354_vm3 = vcmp.eq.s32.totalorder %v1344_v6, %v1341_v5  ;;  %v1392_v5 = vmov %v1717_v5  ;;  %v1361_v6 = vmov %v1719_v6 }
  0x24   : > { %316 = vst [vmem:[%s314_s23] sm:$0xff] %v315_v9  ;;  %319 = vst [vmem:[%s317_s24] sm:$0xff] %v318_v10  ;;  %s324_s14 = smov %s1721_s14  ;;  %s337_s20 = smov %s1730_s20  ;;  %v1358_v5 = vmov %v1717_v5  ;;  %v1395_v6 = vmov %v1719_v6 }
  0x25   : > { %s283_s25 = scalar_lea.vmem [#allocation4], %s1715_s18  ;;  %s1345_s27 = smov [#allocation10]  ;;  %v1375_v5 = vmov %v1717_v5  ;;  %v1378_v6 = vmov %v1719_v6  ;;  %vm1405_vm4 = vcmp.eq.s32.totalorder %v1395_v6, %v1392_v5 }
  0x26   : > { %s1362_s28 = smov [#allocation11]  ;;  %s1379_s21 = smov [#allocation12] }
  0x27   : > { %s1396_s22 = smov [#allocation13] }
  0x28   : > { %v331_v12 = vld [vmem:[%s324_s14] sm:$0xff] }
  0x29   : > { %v335_v13 = vsel %vm334_vm0, 1.0, %v331_v12  ;;  %v1351_v16 = vld [vmem:[%s1345_s27] sm:$0xff] }
  0x2a   : > { %v344_v14 = vld [vmem:[%s337_s20] sm:$0xff]  ;;  %336 = vst [vmem:[%s324_s14] sm:$0xff] %v335_v13  ;;  %v1352_v18 = vsel %vm1349_vm2, %v1351_v16, 0.0 }
  0x2b   : > { %v348_v15 = vsel %vm347_vm1, 1.0, %v344_v14  ;;  %v1368_v17 = vld [vmem:[%s1362_s28] sm:$0xff]  ;;  %v1353_v22 = vmul.f32 %v1352_v18, %v1352_v18 }
  0x2c   : > { %349 = vst [vmem:[%s337_s20] sm:$0xff] %v348_v15  ;;  %v1369_v19 = vsel %vm1349_vm2, %v1368_v17, 0.0  ;;  %v1385_v20 = vld [vmem:[%s1379_s21] sm:$0xff] }
  0x2d   : > { %v1402_v21 = vld [vmem:[%s1396_s22] sm:$0xff]  ;;  %v1370_v23 = vmul.f32 %v1369_v19, %v1369_v19  ;;  %v1386_v24 = vsel %vm1349_vm2, %v1385_v20, 0.0  ;;  %v1355_v29 = vsel %vm1354_vm3, 0.0, %v1353_v22 }
  0x2e   : > { %v1403_v25 = vsel %vm1349_vm2, %v1402_v21, 0.0  ;;  %v1387_v26 = vmul.f32 %v1386_v24, %v1386_v24 }
  0x2f   : > { %v1372_v27 = vadd.f32 %v1370_v23, %v1353_v22  ;;  %v1404_v28 = vmul.f32 %v1403_v25, %v1403_v25  ;;  %v1371_v30 = vadd.f32 %v1370_v23, %v1355_v29 }
  0x31   : > { %v1389_v31 = vadd.f32 %v1387_v26, %v1372_v27  ;;  %v1388_v32 = vadd.f32 %v1387_v26, %v1371_v30  ;;  %v1406_v33 = vsel %vm1405_vm4, 0.0, %v1404_v28 }
  0x33   : > { %v1408_v34 = vadd.f32 %v1404_v28, %v1389_v31  ;;  %v1407_v35 = vadd.f32 %v1406_v33, %v1388_v32 }
  0x35   : > { %1409 = vadd.xlane.f32.xlu0 %v1408_v34 }
  0x39   : > { %1417 = vadd.xlane.f32.xlu0 %v1407_v35 }
  0xc2   : > { %v1410_v36 = vpop.xlane.xlu0 %1409 }
  0xc3   : > { %v1411_v37 = vrot.slane %v1410_v36, 4 }
  0xc5   : > { %v1412_v38 = vadd.f32 %v1411_v37, %v1410_v36 }
  0xc6   : > { %v1418_v39 = vpop.xlane.xlu0 %1417 }
  0xc7   : > { %v1413_v40 = vrot.slane %v1412_v38, 2  ;;  %v1419_v41 = vrot.slane %v1418_v39, 4 }
  0xc9   : > { %v1420_v42 = vadd.f32 %v1419_v41, %v1418_v39  ;;  %v1414_v43 = vadd.f32 %v1413_v40, %v1412_v38 }
  0xcb   : > { %v1421_v44 = vrot.slane %v1420_v42, 2  ;;  %v1415_v46 = vrot.slane %v1414_v43, 1 }
  0xcd   : > { %v1422_v45 = vadd.f32 %v1421_v44, %v1420_v42  ;;  %v1416_v49 = vadd.f32 %v1415_v46, %v1414_v43 }
  0xcf   : > { %v1423_v47 = vrot.slane %v1422_v45, 1 }
  0xd1   : > { %v1424_v48 = vadd.f32 %v1423_v47, %v1422_v45 }
  0xd3   : > { %1510 = vpush %v1424_v48 }
  0xd4   : > { %1512 = vpush %v1416_v49 }
 0x104   : > { %s1511_s29 = spop %1510 }
 0x105   : > { %s1513_s11 = spop %1512 }
 0x106   : > { %s1427_s15 = smul.f32 1e-10, %s1513_s11 }
 0x108   : > { %p1428_p8 = scmp.le.f32.partialorder %s1511_s29, %s1427_s15 }
 0x109   : > { %s1759_s16 = smov (!%p1428_p8), 0  }
 0x10a   : > { %1431 = sbr.rel (%p1428_p8) target bundleno = 948 (0x3b4), region = 507 }
 0x111 LB: >> { %s1764_s23 = smov 0   ;;  %s1603_s16 = sphi %s1759_s16, %s1983_s16  }
 0x112 LB: >>> { %s454_s24 = smov [#allocation10]  ;;  %v458_v5 = vmov %v1717_v5  ;;  %v461_v6 = vmov %v1719_v6  ;;  %s474_s27 = smov [#allocation11]  ;;  %vm777_vm14 = vcmp.eq.s32.totalorder %v1719_v6, 0  ;;  %vm789_vm15 = vcmp.eq.s32.totalorder %v1719_v6, 7  ;;  %s1607_s23 = sphi %s1764_s23, %s453_s23  }
 0x113   : >>> { %v478_v5 = vmov %v1717_v5  ;;  %v481_v6 = vmov %v1719_v6  ;;  %v462_v50 = vld [vmem:[%s454_s24] sm:$0xff]  ;;  %vm465_vm5 = vcmp.eq.s32.totalorder %v461_v6, %v458_v5  ;;  %s494_s28 = smov [#allocation13]  ;;  %s455_s21 = smov [#allocation14] }
 0x114   : >>> { %vm485_vm6 = vcmp.eq.s32.totalorder %v481_v6, %v478_v5  ;;  %v498_v5 = vmov %v1717_v5  ;;  %v501_v6 = vmov %v1719_v6  ;;  %v466_v51 = vsel %vm465_vm5, %v462_v50, 0.0  ;;  %v482_v52 = vld [vmem:[%s474_s27] sm:$0xff]  ;;  %s475_s22 = smov [#allocation15]  ;;  %s495_s29 = smov [#allocation16] }
 0x115   : >>> { %vm505_vm7 = vcmp.eq.s32.totalorder %v501_v6, %v498_v5  ;;  %v467_v53 = vrot.slane %v466_v51, 4  ;;  %v486_v54 = vsel %vm485_vm6, %v482_v52, 0.0  ;;  %v502_v55 = vld [vmem:[%s494_s28] sm:$0xff]  ;;  %s518_s11 = smov [#allocation15]  ;;  %s516_s15 = smov [#allocation14]  ;;  %v567_v5 = vmov %v1717_v5 }
 0x116   : >>> { %v487_v56 = vrot.slane %v486_v54, 4  ;;  %v506_v57 = vsel %vm505_vm7, %v502_v55, 0.0  ;;  %s520_s24 = smov [#allocation16]  ;;  %s555_s27 = smov [#allocation17]  ;;  %v570_v6 = vmov %v1719_v6  ;;  %v582_v5 = vmov %v1717_v5 }
 0x117   : >>> { %v468_v58 = vadd.f32 %v467_v53, %v466_v51  ;;  %v507_v59 = vrot.slane %v506_v57, 4  ;;  %s557_s28 = smov [#allocation18]  ;;  %v585_v6 = vmov %v1719_v6  ;;  %vm572_vm12 = vcmp.eq.s32.totalorder %v570_v6, %v567_v5  ;;  %s1786_s14 = smov %s1721_s14 }
 0x118   : >>> { %v488_v60 = vadd.f32 %v487_v56, %v486_v54  ;;  %vm587_vm13 = vcmp.eq.s32.totalorder %v585_v6, %v582_v5  ;;  %s1789_s30 = smov %s1724_s30  ;;  %s1792_s17 = smov %s1727_s17  ;;  %v825_v52 = vld [vmem:[%s1786_s14] sm:$0xff]  ;;  %v680_v5 = vmov %v1717_v5  ;;  %v683_v6 = vmov %v1719_v6 }
 0x119   : >>> { %v469_v61 = vrot.slane %v468_v58, 2  ;;  %v508_v62 = vadd.f32 %v507_v59, %v506_v57  ;;  %s1796_s20 = smov %s1730_s20  ;;  %v826_v53 = vld [vmem:[%s1789_s30] sm:$0xff]  ;;  %s819_s26 = smov [#allocation22]  ;;  %v653_v5 = vmov %v1717_v5  ;;  %v656_v6 = vmov %v1719_v6 }
 0x11a   : >>> { %v489_v63 = vrot.slane %v488_v60, 2  ;;  %v827_v56 = vld [vmem:[%s1792_s17] sm:$0xff]  ;;  %v694_v5 = vmov %v1717_v5  ;;  %v697_v6 = vmov %v1719_v6  ;;  %vm687_vm0 = vcmp.eq.s32.totalorder %v683_v6, %v680_v5  ;;  %s453_s23 = sadd.s32 1, %s1607_s23  }
 0x11b   : >>> { %v470_v0 = vadd.f32 %v469_v61, %v468_v58  ;;  %v509_v1 = vrot.slane %v508_v62, 2  ;;  %v828_v57 = vld [vmem:[%s1796_s20] sm:$0xff]  ;;  %v667_v5 = vmov %v1717_v5  ;;  %v670_v6 = vmov %v1719_v6  ;;  %p450_p9 = scmp.ge.s32.totalorder %s453_s23, 15  }
 0x11c   : >>> { %v490_v2 = vadd.f32 %v489_v63, %v488_v60  ;;  %vm661_vm1 = vcmp.eq.s32.totalorder %v656_v6, %v653_v5  ;;  %vm702_vm3 = vcmp.eq.s32.totalorder %v697_v6, %v694_v5  ;;  %vm674_vm4 = vcmp.eq.s32.totalorder %v670_v6, %v667_v5 }
 0x11d   : >>> { %v471_v3 = vrot.slane %v470_v0, 1  ;;  %v510_v4 = vadd.f32 %v509_v1, %v508_v62  ;;  %vm716_vm5 = vcmp.eq.s32.totalorder %v1717_v5, 0  ;;  %vm720_vm6 = vcmp.eq.s32.totalorder %v1717_v5, 1 }
 0x11e   : >>> { %v491_v7 = vrot.slane %v490_v2, 1  ;;  %vm733_vm7 = vcmp.eq.s32.totalorder %v1717_v5, 7  ;;  %v354_v5 = vmov (%p450_p9), %v1717_v5  ;;  %v357_v6 = vmov (%p450_p9), %v1719_v6 }
 0x11f   : >>> { %v472_v8 = vadd.f32 %v471_v3, %v470_v0  ;;  %v511_v9 = vrot.slane %v510_v4, 1  ;;  %v407_v5 = vmov (%p450_p9), %v1717_v5 }
 0x120   : >>> { %v492_v10 = vadd.f32 %v491_v7, %v490_v2 }
 0x121   : >>> { %473 = vst [vmem:[%s455_s21] sm:$0x1] %v472_v8  ;;  %v512_v11 = vadd.f32 %v511_v9, %v510_v4  ;;  %s514_s21 = smov [#allocation19] }
 0x122   : >>> { %493 = vst [vmem:[%s475_s22] sm:$0x1] %v492_v10  ;;  %s515_s22 = smov [#allocation20]  ;;  %s559_s21 = smov %s514_s21 }
 0x123   : >>> { %513 = vst [vmem:[%s495_s29] sm:$0x1] %v512_v11  ;;  %s561_s22 = smov %s515_s22  ;;  %s563_s29 = smov [#allocation19] }
 0x128   : >>> { %v517_v14 = vld [vmem:[%s516_s15] sm:$0xff]  ;;  %s576_s15 = smov [#allocation21] }
 0x129   : >>> { %v519_v12 = vld [vmem:[%s518_s11] sm:$0xff]  ;;  %v540_v27 = vand.u32 2147483647, %v517_v14  ;;  %s578_s11 = smov [#allocation20] }
 0x12a   : >>> { %v523_v13 = vmul.f32 2.0, %v519_v12  ;;  %v521_v15 = vld [vmem:[%s520_s24] sm:$0xff]  ;;  %v541_v32 = vand.u32 2147483647, %v519_v12  ;;  %s593_s24 = smov [#allocation21] }
 0x12b   : >>> { %v522_v16 = vsub.f32 %v521_v15, %v517_v14  ;;  %v542_v28 = vand.u32 2147483647, %v521_v15 }
 0x12c   : >>> { %1561 = vrcp.f32 %v523_v13 }
 0x12d   : >>> { %v543_v31 = vmin.f32 %v540_v27, %v542_v28 }
 0x12f   : >>> { %v544_v33 = vmul.f32 1.1920929e-08, %v543_v31 }
 0x131   : >>> { %vm545_vm11 = vcmp.le.f32.partialorder %v541_v32, %v544_v33 }
 0x136   : >>> { %v1562_v17 = vpop.eup %1561 }
 0x137   : >>> { %v525_v18 = vmul.f32 %v1562_v17, %v522_v16 }
 0x139   : >>> { %v527_v19 = vmul.f32 %v525_v18, %v525_v18  ;;  %vm526_vm10 = vcmp.ge.f32.partialorder %v525_v18, 0.0 }
 0x13b   : >>> { %v528_v20 = vadd.f32 1.0, %v527_v19 }
 0x13d   : >>> { %1563 = vrsqrt.f32 %v528_v20  ;;  %vm531_vm8 = vcmp.eq.f32.partialorder %v528_v20, inf  ;;  %v534_v22 = vand.u32 2147483648, %v528_v20  ;;  %vm533_vm9 = vcmp.eq.f32.partialorder %v528_v20, 0.0 }
 0x147   : >>> { %v1564_v21 = vpop.eup %1563 }
 0x148   : >>> { %v530_v23 = vmul.f32 %v1564_v21, %v528_v20 }
 0x14a   : >>> { %v532_v24 = vsel %vm531_vm8, %v528_v20, %v530_v23  ;;  %vm369_vm8 = vcmp.eq.s32.totalorder (%p450_p9), %v357_v6, %v354_v5  ;;  %v410_v6 = vmov (%p450_p9), %v1719_v6  ;;  %v373_v5 = vmov (%p450_p9), %v1717_v5 }
 0x14b   : >>> { %v535_v25 = vsel %vm533_vm9, %v534_v22, %v532_v24  ;;  %v376_v6 = vmov (%p450_p9), %v1719_v6  ;;  %v390_v5 = vmov (%p450_p9), %v1717_v5  ;;  %vm422_vm9 = vcmp.eq.s32.totalorder (%p450_p9), %v410_v6, %v407_v5 }
 0x14c   : >>> { %v536_v26 = vxor.u32 2147483648, %v535_v25  ;;  %v393_v6 = vmov (%p450_p9), %v1719_v6 }
 0x14e   : >>> { %v537_v29 = vsel %vm526_vm10, %v535_v25, %v536_v26 }
 0x14f   : >>> { %v538_v30 = vadd.f32 %v537_v29, %v525_v18 }
 0x151   : >>> { %1565 = vrcp.f32 %v538_v30 }
 0x15b   : >>> { %v1566_v34 = vpop.eup %1565 }
 0x15c   : >>> { %v546_v35 = vsel %vm545_vm11, 0.0, %v1566_v34 }
 0x15d   : >>> { %v547_v36 = vmul.f32 %v546_v35, %v546_v35  ;;  %v551_v37 = vmul.f32 %v546_v35, %v519_v12 }
 0x15f   : >>> { %v548_v38 = vadd.f32 1.0, %v547_v36  ;;  %v552_v39 = vsub.f32 %v517_v14, %v551_v37  ;;  %v554_v40 = vadd.f32 %v551_v37, %v521_v15 }
 0x161   : >>> { %1567 = vrsqrt.f32 %v548_v38  ;;  %556 = vst [vmem:[%s555_s27] sm:$0xff] %v552_v39  ;;  %558 = vst [vmem:[%s557_s28] sm:$0xff] %v554_v40  ;;  %s1779_s27 = smov [#allocation10]  ;;  %s591_s28 = smov [#allocation22] }
 0x162   : >>> { %v601_v49 = vld [vmem:[%s1779_s27] sm:$0xff] }
 0x16b   : >>> { %v1568_v41 = vpop.eup %1567 }
 0x16c   : >>> { %560 = vst [vmem:[%s559_s21] sm:$0xff] %v1568_v41  ;;  %v550_v42 = vmul.f32 %v1568_v41, %v546_v35  ;;  %s1781_s21 = smov [#allocation11] }
 0x16d   : >>> { %v602_v50 = vld [vmem:[%s1781_s21] sm:$0xff] }
 0x16e   : >>> { %562 = vst [vmem:[%s561_s22] sm:$0xff] %v550_v42  ;;  %s1783_s22 = smov [#allocation13] }
 0x16f   : >>> { %v604_v51 = vld [vmem:[%s1783_s22] sm:$0xff] }
 0x173   : >>> { %v564_v43 = vld [vmem:[%s563_s29] ss:$0 sm:$0xff]  ;;  %s817_s29 = smov [#allocation21] }
 0x174   : >>> { %v573_v44 = vsel %vm572_vm12, %v564_v43, 0.0 }
 0x175   : >>> { %574 = vadd.xlane.f32.xlu0 %v573_v44  ;;  %v579_v45 = vld [vmem:[%s578_s11] ss:$0 sm:$0xff]  ;;  %s1798_s11 = smov [#allocation12] }
 0x176   : >>> { %v588_v46 = vsel %vm587_vm13, %v579_v45, 0.0  ;;  %v603_v58 = vld [vmem:[%s1798_s11] sm:$0xff] }
 0x179   : >>> { %589 = vadd.xlane.f32.xlu0 %v588_v46 }
 0x202   : >>> { %v575_v47 = vpop.xlane.xlu0 %574 }
 0x203   : >>> { %577 = vst [vmem:[%s576_s15] sm:$0xff] %v575_v47  ;;  %s595_s15 = smov [#allocation22] }
 0x206   : >>> { %v590_v48 = vpop.xlane.xlu0 %589 }
 0x207   : >>> { %592 = vst [vmem:[%s591_s28] sm:$0xff] %v590_v48  ;;  %s1825_s28 = smov [#allocation12] }
 0x20a   : >>> { %v594_v54 = vld [vmem:[%s593_s24] sm:$0xff]  ;;  %s623_s24 = smov [#allocation20] }
 0x20b   : >>> { %v818_v55 = vld [vmem:[%s817_s29] sm:$0xff]  ;;  %v605_v59 = vmul.f32 %v601_v49, %v594_v54  ;;  %v608_v60 = vmul.f32 %v602_v50, %v594_v54  ;;  %v615_v61 = vmul.f32 %v604_v51, %v594_v54  ;;  %v612_v4 = vmul.f32 %v603_v58, %v594_v54  ;;  %s650_s29 = smov [#allocation17] }
 0x20c   : >>> { %v829_v62 = vmul.f32 %v825_v52, %v818_v55  ;;  %v832_v63 = vmul.f32 %v826_v53, %v818_v55  ;;  %v836_v0 = vmul.f32 %v827_v56, %v818_v55  ;;  %v839_v1 = vmul.f32 %v828_v57, %v818_v55  ;;  %v624_v24 = vld [vmem:[%s623_s24] ss:$0 sm:$0xff]  ;;  %s690_s24 = smov [#allocation13] }
 0x20d   : >>> { %v657_v55 = vld [vmem:[%s650_s29] ss:$0 sm:$0xff]  ;;  %s706_s29 = smov [#allocation11] }
 0x20e   : >>> { %v596_v2 = vld [vmem:[%s595_s15] sm:$0xff]  ;;  %s677_s15 = smov [#allocation12] }
 0x20f   : >>> { %v820_v3 = vld [vmem:[%s819_s26] sm:$0xff]  ;;  %v609_v7 = vmul.f32 %v604_v51, %v596_v2  ;;  %v611_v8 = vmul.f32 %v601_v49, %v596_v2  ;;  %v614_v9 = vmul.f32 %v602_v50, %v596_v2  ;;  %v606_v14 = vmul.f32 %v603_v58, %v596_v2  ;;  %s621_s26 = smov [#allocation19] }
 0x210   : >>> { %v830_v10 = vmul.f32 %v827_v56, %v820_v3  ;;  %v833_v11 = vmul.f32 %v828_v57, %v820_v3  ;;  %v835_v12 = vmul.f32 %v825_v52, %v820_v3  ;;  %v838_v13 = vmul.f32 %v826_v53, %v820_v3  ;;  %v622_v23 = vld [vmem:[%s621_s26] ss:$0 sm:$0xff]  ;;  %s649_s26 = smov [#allocation10] }
 0x211   : >>> { %v610_v15 = vsub.f32 %v608_v60, %v609_v7  ;;  %v616_v16 = vadd.f32 %v615_v61, %v614_v9  ;;  %v613_v18 = vadd.f32 %v612_v4, %v611_v8  ;;  %v607_v22 = vsub.f32 %v605_v59, %v606_v14 }
 0x212   : >>> { %v831_v17 = vsub.f32 %v829_v62, %v830_v10  ;;  %v834_v19 = vsub.f32 %v832_v63, %v833_v11  ;;  %v837_v20 = vadd.f32 %v836_v0, %v835_v12  ;;  %v840_v21 = vadd.f32 %v839_v1, %v838_v13 }
 0x213   : >>> { %618 = vst [vmem:[%s1781_s21] sm:$0xff] %v610_v15  ;;  %620 = vst [vmem:[%s1783_s22] sm:$0xff] %v616_v16  ;;  %s1827_s21 = smov [#allocation13]  ;;  %s1831_s22 = smov [#allocation11] }
 0x214   : >>> { %841 = vst [vmem:[%s1786_s14] sm:$0xff] %v831_v17  ;;  %619 = vst [vmem:[%s1798_s11] sm:$0xff] %v613_v18  ;;  %s845_s14 = smov %s1721_s14  ;;  %s691_s11 = smov [#allocation18] }
 0x215   : >>> { %842 = vst [vmem:[%s1789_s30] sm:$0xff] %v834_v19  ;;  %843 = vst [vmem:[%s1792_s17] sm:$0xff] %v837_v20  ;;  %s846_s17 = smov %s1727_s17  ;;  %s1818_s30 = smov %s1724_s30  ;;  %v698_v56 = vld [vmem:[%s691_s11] ss:$0 sm:$0xff] }
 0x216   : >>> { %844 = vst [vmem:[%s1796_s20] sm:$0xff] %v840_v21  ;;  %617 = vst [vmem:[%s1779_s27] sm:$0xff] %v607_v22  ;;  %s1821_s20 = smov %s1730_s20  ;;  %s1829_s27 = smov [#allocation10] }
 0x217   : >>> { %s1611_s11 = smov 127  }
 0x21a   : >>> { %v632_v39 = vld [vmem:[%s1827_s21] sm:$0xff] }
 0x21b   : >>> { %v847_v25 = vld [vmem:[%s845_s14] ss:$0 sm:$0xff]  ;;  %v1489_v27 = vld [vmem:[%s845_s14 + $0x7] ss:$0 sm:$0xff]  ;;  %v640_v42 = vmul.f32 %v632_v39, %v624_v24  ;;  %v643_v46 = vmul.f32 %v632_v39, %v622_v23 }
 0x21c   : >>> { %v1488_v26 = vld [vmem:[%s845_s14 - $0x1] sm:$0xfe]  ;;  %v1493_v34 = vld [vmem:[%s1818_s30 + $0x7] ss:$0 sm:$0xff] }
 0x21d   : >>> { %v854_v28 = vsel %vm777_vm14, %v847_v25, %v1488_v26  ;;  %v858_v29 = vld [vmem:[%s846_s17] ss:$0 sm:$0xff]  ;;  %v1491_v30 = vld [vmem:[%s846_s17 + $0x1] sm:$0x7f] }
 0x21e   : >>> { %v871_v31 = vld [vmem:[%s1818_s30] ss:$0 sm:$0xff]  ;;  %857 = vst [vmem:[%s845_s14] sm:$0xff] %v854_v28  ;;  %v866_v32 = vsel %vm789_vm15, %v1489_v27, %v1491_v30  ;;  %v1495_v37 = vld [vmem:[%s1821_s20 + $0x1] sm:$0x7f] }
 0x21f   : >>> { %v1492_v33 = vld [vmem:[%s1818_s30 - $0x1] sm:$0xfe]  ;;  %1490 = vst [vmem:[%s845_s14 + $0x1] sm:$0x1] %v858_v29  ;;  %868 = vst [vmem:[%s846_s17] sm:$0xff] %v866_v32  ;;  %v890_v40 = vsel %vm789_vm15, %v1493_v34, %v1495_v37 }
 0x220   : >>> { %v882_v35 = vld [vmem:[%s1821_s20] ss:$0 sm:$0xff]  ;;  %v878_v36 = vsel %vm777_vm14, %v871_v31, %v1492_v33 }
 0x221   : >>> { %v631_v38 = vld [vmem:[%s1825_s28] sm:$0xff]  ;;  %881 = vst [vmem:[%s1818_s30] sm:$0xff] %v878_v36  ;;  %892 = vst [vmem:[%s1821_s20] sm:$0xff] %v890_v40 }
 0x222   : >>> { %v639_v41 = vmul.f32 %v631_v38, %v622_v23  ;;  %v642_v43 = vmul.f32 %v631_v38, %v624_v24  ;;  %v629_v44 = vld [vmem:[%s1829_s27] sm:$0xff]  ;;  %1494 = vst [vmem:[%s1818_s30 + $0x1] sm:$0x1] %v882_v35 }
 0x223   : >>> { %v630_v45 = vld [vmem:[%s1831_s22] sm:$0xff]  ;;  %v633_v47 = vmul.f32 %v629_v44, %v622_v23  ;;  %v636_v49 = vmul.f32 %v629_v44, %v624_v24 }
 0x224   : >>> { %v634_v48 = vmul.f32 %v630_v45, %v624_v24  ;;  %v641_v50 = vsub.f32 %v639_v41, %v640_v42  ;;  %v637_v51 = vmul.f32 %v630_v45, %v622_v23  ;;  %v644_v52 = vadd.f32 %v643_v46, %v642_v43 }
 0x226   : >>> { %v635_v53 = vsub.f32 %v633_v47, %v634_v48  ;;  %647 = vst [vmem:[%s1825_s28] sm:$0xff] %v641_v50  ;;  %v638_v54 = vadd.f32 %v637_v51, %v636_v49  ;;  %648 = vst [vmem:[%s1827_s21] sm:$0xff] %v644_v52  ;;  %s664_s28 = smov [#allocation11]  ;;  %s1865_s21 = smov [#allocation12] }
 0x228   : >>> { %645 = vst [vmem:[%s1829_s27] sm:$0xff] %v635_v53  ;;  %646 = vst [vmem:[%s1831_s22] sm:$0xff] %v638_v54  ;;  %s705_s27 = smov [#allocation10]  ;;  %s1610_s22 = smov 1  }
 0x22d   : >>> { %v684_v57 = vld [vmem:[%s677_s15] sm:$0xff] }
 0x22e   : >>> { %v688_v58 = vsel %vm687_vm0, 0.0, %v684_v57  ;;  %v699_v60 = vld [vmem:[%s690_s24] sm:$0xff] }
 0x22f   : >>> { %v658_v59 = vld [vmem:[%s649_s26] sm:$0xff]  ;;  %689 = vst [vmem:[%s677_s15] sm:$0xff] %v688_v58  ;;  %v703_v63 = vsel %vm702_vm3, %v698_v56, %v699_v60  ;;  %s1868_s15 = smov [#allocation13] }
 0x230   : >>> { %v662_v61 = vsel %vm661_vm1, %v657_v55, %v658_v59  ;;  %v671_v62 = vld [vmem:[%s664_s28] sm:$0xff]  ;;  %704 = vst [vmem:[%s690_s24] sm:$0xff] %v703_v63  ;;  %s793_s24 = smov [#allocation11] }
 0x231   : >>> { %663 = vst [vmem:[%s649_s26] sm:$0xff] %v662_v61  ;;  %v675_v0 = vsel %vm674_vm4, 0.0, %v671_v62  ;;  %s769_s26 = smov [#allocation10] }
 0x232   : >>> { %676 = vst [vmem:[%s664_s28] sm:$0xff] %v675_v0  ;;  %s770_s28 = smov [#allocation12] }
 0x236   : >>> { %v743_v1 = vld [vmem:[%s1865_s21] sm:$0xff] }
 0x237   : >>> { %744 = vrot.lane.b32.xlu0 %v743_v1, %s1610_s22  ;;  %v739_v4 = vld [vmem:[%s1868_s15] sm:$0xff] }
 0x238   : >>> { %v711_v2 = vld [vmem:[%s705_s27] sm:$0xff] }
 0x239   : >>> { %712 = vrot.lane.b32.xlu1 %v711_v2, %s1610_s22  ;;  %v707_v3 = vld [vmem:[%s706_s29] sm:$0xff] }
 0x23d   : >>> { %708 = vrot.lane.b32.xlu1 %v707_v3, %s1610_s22 }
 0x241   : >>> { %729 = vrot.lane.b32.xlu1 %v707_v3, %s1611_s11 }
 0x245   : >>> { %740 = vrot.lane.b32.xlu1 %v739_v4, %s1610_s22  ;;  %s358_s22 = smov (%p450_p9), [#allocation10] }
 0x249   : >>> { %761 = vrot.lane.b32.xlu1 %v739_v4, %s1611_s11  ;;  %s394_s11 = smov (%p450_p9), [#allocation12] }
 0x2a9   : >>> { %v745_v13 = vpop.permute.xlu0 %744 }
 0x2aa   : >>> { %v749_v15 = vsel %vm716_vm5, %v743_v1, %v745_v13 }
 0x2ab   : >>> { %v713_v7 = vpop.permute.xlu1 %712 }
 0x2ac   : >>> { %v717_v8 = vsel %vm716_vm5, %v711_v2, %v713_v7 }
 0x2af   : >>> { %v709_v9 = vpop.permute.xlu1 %708 }
 0x2b0   : >>> { %v721_v10 = vsel %vm720_vm6, %v709_v9, %v717_v8 }
 0x2b1   : >>> { %v727_v11 = vsel %vm1349_vm2, %v721_v10, 0.0 }
 0x2b2   : >>> { %735 = vst [vmem:[%s705_s27] sm:$0xff] %v727_v11  ;;  %s794_s27 = smov [#allocation13] }
 0x2b3   : >>> { %v730_v12 = vpop.permute.xlu1 %729 }
 0x2b4   : >>> { %v734_v14 = vsel %vm733_vm7, %v711_v2, %v730_v12 }
 0x2b5   : >>> { %736 = vst [vmem:[%s706_s29] sm:$0xff] %v734_v14  ;;  %s377_s29 = smov (%p450_p9), [#allocation11] }
 0x2b7   : >>> { %v741_v16 = vpop.permute.xlu1 %740 }
 0x2b8   : >>> { %v753_v17 = vsel %vm720_vm6, %v741_v16, %v749_v15 }
 0x2b9   : >>> { %v771_v18 = vld [vmem:[%s769_s26] ss:$0 sm:$0xff]  ;;  %v1481_v20 = vld [vmem:[%s769_s26 + $0x7] ss:$0 sm:$0xff]  ;;  %v759_v22 = vsel %vm1349_vm2, %v753_v17, 0.0 }
 0x2ba   : >>> { %v1480_v19 = vld [vmem:[%s769_s26 - $0x1] sm:$0xfe]  ;;  %767 = vst [vmem:[%s1865_s21] sm:$0xff] %v759_v22  ;;  %s893_s21 = sadd.s32 (%p450_p9), 1, %s1603_s16  }
 0x2bb   : >>> { %v778_v21 = vsel %vm777_vm14, %v771_v18, %v1480_v19  ;;  %v762_v23 = vpop.permute.xlu1 %761  ;;  %p446_p10 = scmp.ge.s32.totalorder (%p450_p9), %s893_s21, 15  ;;  %s1983_s16 = smov (%p450_p9), %s893_s21 }
 0x2bc   : >>> { %781 = vst [vmem:[%s769_s26] sm:$0xff] %v778_v21  ;;  %v795_v24 = vld [vmem:[%s793_s24] ss:$0 sm:$0xff]  ;;  %v1485_v26 = vld [vmem:[%s793_s24 + $0x7] ss:$0 sm:$0xff]  ;;  %v766_v27 = vsel %vm733_vm7, %v743_v1, %v762_v23 }
 0x2bd   : >>> { %v1484_v25 = vld [vmem:[%s793_s24 - $0x1] sm:$0xfe]  ;;  %768 = vst [vmem:[%s1868_s15] sm:$0xff] %v766_v27  ;;  %s411_s15 = smov (%p450_p9), [#allocation13] }
 0x2be   : >>> { %v802_v28 = vsel %vm777_vm14, %v795_v24, %v1484_v25 }
 0x2bf   : >>> { %805 = vst [vmem:[%s793_s24] sm:$0xff] %v802_v28 }
 0x2c1   : >>> { %v782_v29 = vld [vmem:[%s770_s28] ss:$0 sm:$0xff]  ;;  %v1483_v30 = vld [vmem:[%s770_s28 + $0x1] sm:$0x7f] }
 0x2c2   : >>> { %1482 = vst [vmem:[%s769_s26 + $0x1] sm:$0x1] %v782_v29  ;;  %v790_v31 = vsel %vm789_vm15, %v1481_v20, %v1483_v30  ;;  %452 = sbr.rel (!%p450_p9) target bundleno = 274 (0x112), region = 502 }
 0x2c3   : >>> { %792 = vst [vmem:[%s770_s28] sm:$0xff] %v790_v31 }
 0x2c4   : >>> { %v806_v32 = vld [vmem:[%s794_s27] ss:$0 sm:$0xff]  ;;  %v1487_v33 = vld [vmem:[%s794_s27 + $0x1] sm:$0x7f] }
 0x2c5   : >>> { %1486 = vst [vmem:[%s793_s24 + $0x1] sm:$0x1] %v806_v32  ;;  %v814_v34 = vsel %vm789_vm15, %v1485_v26, %v1487_v33 }
 0x2c6   : >>> { %816 = vst [vmem:[%s794_s27] sm:$0xff] %v814_v34 }
 0x2c9   : >> { %v364_v35 = vld [vmem:[%s358_s22] sm:$0xff] }
 0x2ca   : >> { %v365_v37 = vsel %vm1349_vm2, %v364_v35, 0.0  ;;  %v400_v39 = vld [vmem:[%s394_s11] sm:$0xff] }
 0x2cb   : >> { %v366_v41 = vmul.f32 %v365_v37, %v365_v37  ;;  %v401_v43 = vsel %vm1349_vm2, %v400_v39, 0.0 }
 0x2cc   : >> { %v383_v36 = vld [vmem:[%s377_s29] sm:$0xff]  ;;  %v402_v45 = vmul.f32 %v401_v43, %v401_v43 }
 0x2cd   : >> { %v384_v38 = vsel %vm1349_vm2, %v383_v36, 0.0  ;;  %v417_v40 = vld [vmem:[%s411_s15] sm:$0xff]  ;;  %v370_v48 = vsel %vm369_vm8, 0.0, %v366_v41 }
 0x2ce   : >> { %v385_v42 = vmul.f32 %v384_v38, %v384_v38  ;;  %v418_v44 = vsel %vm1349_vm2, %v417_v40, 0.0 }
 0x2cf   : >> { %v419_v47 = vmul.f32 %v418_v44, %v418_v44 }
 0x2d0   : >> { %v387_v46 = vadd.f32 %v385_v42, %v366_v41  ;;  %v386_v49 = vadd.f32 %v385_v42, %v370_v48 }
 0x2d1   : >> { %v423_v52 = vsel %vm422_vm9, 0.0, %v419_v47 }
 0x2d2   : >> { %v404_v50 = vadd.f32 %v402_v45, %v387_v46  ;;  %v403_v51 = vadd.f32 %v402_v45, %v386_v49 }
 0x2d4   : >> { %v425_v53 = vadd.f32 %v419_v47, %v404_v50  ;;  %v424_v54 = vadd.f32 %v423_v52, %v403_v51 }
 0x2d6   : >> { %426 = vadd.xlane.f32.xlu0 %v425_v53 }
 0x2da   : >> { %434 = vadd.xlane.f32.xlu0 %v424_v54 }
 0x363   : >> { %v427_v55 = vpop.xlane.xlu0 %426 }
 0x364   : >> { %v428_v56 = vrot.slane %v427_v55, 4 }
 0x366   : >> { %v429_v57 = vadd.f32 %v428_v56, %v427_v55 }
 0x367   : >> { %v435_v58 = vpop.xlane.xlu0 %434 }
 0x368   : >> { %v430_v59 = vrot.slane %v429_v57, 2  ;;  %v436_v60 = vrot.slane %v435_v58, 4 }
 0x36a   : >> { %v437_v61 = vadd.f32 %v436_v60, %v435_v58  ;;  %v431_v62 = vadd.f32 %v430_v59, %v429_v57 }
 0x36c   : >> { %v438_v63 = vrot.slane %v437_v61, 2  ;;  %v432_v1 = vrot.slane %v431_v62, 1 }
 0x36e   : >> { %v439_v0 = vadd.f32 %v438_v63, %v437_v61  ;;  %v433_v4 = vadd.f32 %v432_v1, %v431_v62 }
 0x370   : >> { %v440_v2 = vrot.slane %v439_v0, 1 }
 0x372   : >> { %v441_v3 = vadd.f32 %v440_v2, %v439_v0 }
 0x374   : >> { %1514 = vpush %v441_v3 }
 0x375   : >> { %1516 = vpush %v433_v4 }
 0x3a5   : >> { %s1515_s23 = spop %1514 }
 0x3a6   : >> { %s1517_s26 = spop %1516 }
 0x3a7   : >> { %s444_s24 = smul.f32 1e-10, %s1517_s26 }
 0x3a9   : >> { %p445_p11 = scmp.le.f32.partialorder %s1515_s23, %s444_s24 }
 0x3ab   : >> { %p447_p12 = por %p446_p10, %p445_p11 }
 0x3ad   : > { %895 = sbr.rel (!%p447_p12) target bundleno = 273 (0x111), region = 513 }
 0x3b4 PF: > { %s900_s28 = smov [#allocation10]  ;;  %v904_v5 = vmov %v1717_v5  ;;  %v907_v6 = vmov %v1719_v6  ;;  %s920_s16 = smov [#allocation13] }
 0x3b5   : > { %v924_v5 = vmov %v1717_v5  ;;  %v927_v6 = vmov %v1719_v6  ;;  %v908_v7 = vld [vmem:[%s900_s28] sm:$0xff]  ;;  %vm911_vm10 = vcmp.eq.s32.totalorder %v907_v6, %v904_v5  ;;  %s896_s27 = sand.u32 7, %s1678_s12   ;;  %s1984_s22 = scalar_lea.vmem [#allocation5], %s1715_s18 }
 0x3b6   : > { %vm931_vm11 = vcmp.eq.s32.totalorder %v927_v6, %v924_v5  ;;  %v912_v8 = vsel %vm911_vm10, %v908_v7, 0.0  ;;  %v928_v10 = vld [vmem:[%s920_s16] sm:$0xff]  ;;  %s897_s21 = scalar_lea.vmem %s283_s25, %s896_s27 [#allocation4]  ;;  %s899_s29 = scalar_lea.vmem %s1984_s22, %s896_s27 [#allocation5] }
 0x3b7   : > { %v913_v9 = vrot.slane %v912_v8, 4  ;;  %v932_v11 = vsel %vm931_vm11, %v928_v10, 0.0  ;;  %s901_s21 = smov %s897_s21  ;;  %s921_s29 = smov %s899_s29 }
 0x3b8   : > { %v933_v13 = vrot.slane %v932_v11, 4  ;;  %s967_s11 = sshrl.u32 (%p1692_p3), %s1678_s12, 3 }
 0x3b9   : > { %v914_v12 = vadd.f32 %v913_v9, %v912_v8  ;;  %s1502_s15 = sshll.u32 (%p1692_p3), %s967_s11, 3 }
 0x3ba   : > { %v934_v15 = vadd.f32 %v933_v13, %v932_v11  ;;  %s969_s24 = scalar_lea.vmem (%p1692_p3), %s1975_s4, %s1502_s15 }
 0x3bb   : > { %v915_v14 = vrot.slane %v914_v12, 2 }
 0x3bc   : > { %v935_v17 = vrot.slane %v934_v15, 2 }
 0x3bd   : > { %v916_v16 = vadd.f32 %v915_v14, %v914_v12 }
 0x3be   : > { %v936_v19 = vadd.f32 %v935_v17, %v934_v15  ;;  %966 = sbr.rel (!%p1692_p3) target bundleno = 972 (0x3cc), region = 174 }
 0x3bf   : > { %v917_v18 = vrot.slane %v916_v16, 1 }
 0x3c0   : > { %v937_v6 = vrot.slane %v936_v19, 1 }
 0x3c1   : > { %v918_v5 = vadd.f32 %v917_v18, %v916_v16 }
 0x3c2   : > { %v938_v20 = vadd.f32 %v937_v6, %v936_v19 }
 0x3c3   : > { %919 = vst [vmem:[%s901_s21] sm:$0x1] %v918_v5 }
 0x3c4   : > { %939 = vst [vmem:[%s921_s29] sm:$0x1] %v938_v20 }
 0x3ca   : > { %v997_v21 = vld [vmem:[%s283_s25] sm:$0xff] }
 0x3cb   : > { %998 = vst [vmem:[%s969_s24] sm:$0xff] %v997_v21 }
 0x3cc PF: > { %1004 = sbr.rel (!%p1692_p3) target bundleno = 980 (0x3d4), region = 212  ;;  %s1005_s28 = sshrl.u32 (%p1692_p3), %s1678_s12, 3 }
 0x3cd   : > { %s1985_s16 = scalar_lea.vmem (%p1692_p3), [#allocation5], %s1715_s18  ;;  %s1503_s27 = sshll.u32 (%p1692_p3), %s1005_s28, 3 }
 0x3ce   : > { %s1007_s25 = scalar_lea.vmem (%p1692_p3), %s1976_s5, %s1503_s27 }
 0x3d2   : > { %v1035_v22 = vld [vmem:[%s1985_s16] sm:$0xff] (%p1692_p3) }
 0x3d3   : > { %1036 = vst [vmem:[%s1007_s25] sm:$0xff] %v1035_v22 }
 0x3d4 PF: > { %s1504_s29 = sshll.u32 %s1678_s12, 3  ;;  %v1069_v23 = vld [vmem:[%s1721_s14] sm:$0xff]  ;;  %v1103_v24 = vld [vmem:[%s1724_s30] sm:$0xff] }
 0x3d5   : > { %v1137_v25 = vld [vmem:[%s1727_s17] sm:$0xff]  ;;  %s1041_s18 = scalar_lea.vmem %s1977_s6, %s1504_s29  ;;  %s1075_s26 = scalar_lea.vmem %s1978_s7, %s1504_s29  ;;  %v1171_v26 = vld [vmem:[%s1730_s20] sm:$0xff] }
 0x3d6   : > { %1070 = vst [vmem:[%s1041_s18] sm:$0xff] %v1069_v23  ;;  %1104 = vst [vmem:[%s1075_s26] sm:$0xff] %v1103_v24  ;;  %s1109_s16 = scalar_lea.vmem %s1979_s8, %s1504_s29  ;;  %s1143_s14 = scalar_lea.vmem %s1980_s9, %s1504_s29 }
 0x3d7   : > { %1138 = vst [vmem:[%s1109_s16] sm:$0xff] %v1137_v25  ;;  %1172 = vst [vmem:[%s1143_s14] sm:$0xff] %v1171_v26 }
 0x3d8 PF: > { %s1986_s17 = sld [smem:[#allocation23_spill]]  ;;  %p13_p13 = scmp.ge.s32.totalorder %s1681_s13, 18  }
 0x3d9   : > { %s1987_s30 = smov %s1595_s10  ;;  %s1989_s11 = smov %s1681_s13 }
 0x3da   :  { %15 = sbr.rel (!%p13_p13) target bundleno = 2 (0x2), region = 524 }
 0x3de   : > { %s1988_s10 = smov %s1986_s17 }

// kernel: gsr_layer_forward_batched.1
= control target key start
LH: loop header
LB: loop body
LE: loop exit
PB: predicated region body
PF: predicated region fallthrough
CT: control target
= control target key end

     0   :  { %s3541_s9 = smov 0   ;;  %s4275_s0 = inlined_call_operand.vmem [shape: f32[32,16], index: 0, kind: input, shape index: {}]   ;;  %s4276_s1 = inlined_call_operand.vmem [shape: f32[16,48,32], index: 1, kind: input, shape index: {}]   ;;  %s4277_s2 = inlined_call_operand.vmem [shape: f32[16,2,32,32], index: 2, kind: output, shape index: {}]  }
   0x1 LB: > { %s2720_s10 = sadd.s32 4294967295, %s3524_s9   ;;  %p2724_p0 = scmp.ge.s32.totalorder %s3524_s9, 1  ;;  %s3524_s9 = sphi %s3541_s9, %s12_s9  }
   0x2   : > { %p114_p1 = scmp.lt.s32.totalorder %s3524_s9, 3 }
   0x4   : > { %p115_p2 = pnand %p2724_p0, %p114_p1 }
   0x5   : > { %s2725_s11 = sshll.u32 (!%p115_p2), %s2720_s10, 3  ;;  %vm204_vm0 = vcmask (!%p115_p2), 261120   ;;  %vm853_vm1 = vcmask (!%p115_p2), 130048  }
   0x6   : > { %118 = sbr.rel (%p115_p2) target bundleno = 760 (0x2f8), region = 28  ;;  %p139_p3 = scmp.lt.s32.totalorder (!%p115_p2), %s2725_s11, 15  ;;  %vm3715_vm14 = vmpackc.low (!%p115_p2), %vm204_vm0, %vm204_vm0 }
   0xd   : > { %s4289_s11 = smov (!%p139_p3, %s2725_s11), 15 }
   0xe   : > { %s3509_s12 = smul.u32 48, %s4289_s11  ;;  %s2876_s24 = sshll.u32 %s4289_s11, 6 }
   0xf   : > { %s3691_s27 = scalar_lea.vmem %s4277_s2, %s2876_s24 }
  0x10   : > { %s3555_s15 = scalar_lea.vmem %s4276_s1, %s3509_s12 }
  0x11   : > { %v172_v0 = vld [vmem:[%s3555_s15 + $0x10] sm:$0xff]  ;;  %v173_v1 = vld [vmem:[%s3555_s15 + $0x18] sm:$0xff]  ;;  %v176_v2 = vld [vmem:[%s3555_s15 + $0x40] sm:$0xff] }
  0x12   : > { %v3317_v3 = vpack.c.bf16 %v173_v1, %v172_v0  ;;  %v177_v4 = vld [vmem:[%s3555_s15 + $0x48] sm:$0xff]  ;;  %v174_v5 = vld [vmem:[%s3555_s15 + $0x20] sm:$0xff]  ;;  %v178_v9 = vld [vmem:[%s3555_s15 + $0x50] sm:$0xff] }
  0x13   : > { %v175_v6 = vld [vmem:[%s3555_s15 + $0x28] sm:$0xff]  ;;  %v3325_v7 = vpack.c.bf16 %v177_v4, %v176_v2  ;;  %v179_v10 = vld [vmem:[%s3555_s15 + $0x58] sm:$0xff]  ;;  %v156_v11 = vld [vmem:[%s3555_s15] sm:$0xff] }
  0x14   : > { %v3321_v8 = vpack.c.bf16 %v175_v6, %v174_v5  ;;  %3318 = vmatprep.subr.bf16.mxu0 %v3317_v3  ;;  %v3329_v12 = vpack.c.bf16 %v179_v10, %v178_v9  ;;  %3045 = vmatprep.mubr.msk.f32.mxu0 %vm204_vm0, %v156_v11  ;;  %v158_v13 = vld [vmem:[%s3555_s15 + $0x30] sm:$0xff]  ;;  %v181_v15 = vld [vmem:[%s3555_s15 + $0x78] sm:$0xff]  ;;  %v184_v16 = vld [vmem:[%s3555_s15 + $0xa0] sm:$0xff] }
  0x15   : > { %3326 = vmatprep.subr.bf16.mxu1 %v3325_v7  ;;  %3320 = vmatpush3.bf16.msra.mxu0 %v3317_v3  ;;  %v180_v14 = vld [vmem:[%s3555_s15 + $0x70] sm:$0xff]  ;;  %v185_v18 = vld [vmem:[%s3555_s15 + $0xa8] sm:$0xff]  ;;  %v182_v20 = vld [vmem:[%s3555_s15 + $0x80] sm:$0xff] }
  0x16   : > { %3328 = vmatpush3.bf16.msra.mxu1 %v3325_v7  ;;  %3322 = vmatprep.subr.bf16.mxu0 %v3321_v8  ;;  %v3333_v17 = vpack.c.bf16 %v181_v15, %v180_v14  ;;  %v3341_v19 = vpack.c.bf16 %v185_v18, %v184_v16  ;;  %v183_v21 = vld [vmem:[%s3555_s15 + $0x88] sm:$0xff]  ;;  %v186_v22 = vld [vmem:[%s3555_s15 + $0xb0] sm:$0xff]  ;;  %v187_v23 = vld [vmem:[%s3555_s15 + $0xb8] sm:$0xff] }
  0x17   : > { %3330 = vmatprep.subr.bf16.mxu1 %v3329_v12  ;;  %3056 = vmatprep.mubr.msk.f32.mxu1 %vm204_vm0, %v158_v13  ;;  %v157_v24 = vld [vmem:[%s3555_s15 + $0x8] sm:$0xff]  ;;  %v159_v25 = vld [vmem:[%s3555_s15 + $0x38] sm:$0xff]  ;;  %v3337_v26 = vpack.c.bf16 %v183_v21, %v182_v20  ;;  %v3345_v27 = vpack.c.bf16 %v187_v23, %v186_v22  ;;  %v188_v28 = vld [vmem:[%s3555_s15 + $0xd0] sm:$0xff] }
  0x18   : > { %v189_v29 = vld [vmem:[%s3555_s15 + $0xd8] sm:$0xff]  ;;  %v160_v30 = vld [vmem:[%s3555_s15 + $0x60] sm:$0xff]  ;;  %v193_v32 = vld [vmem:[%s3555_s15 + $0x108] sm:$0xff] }
  0x19   : > { %3324 = vmatpush3.bf16.msra.mxu0 %v3321_v8  ;;  %v192_v31 = vld [vmem:[%s3555_s15 + $0x100] sm:$0xff]  ;;  %v162_v33 = vld [vmem:[%s3555_s15 + $0x90] sm:$0xff]  ;;  %v3349_v34 = vpack.c.bf16 %v189_v29, %v188_v28  ;;  %v191_v37 = vld [vmem:[%s3555_s15 + $0xe8] sm:$0xff]  ;;  %v1546_v28 = vlaneseq }
  0x1a   : > { %3332 = vmatpush3.bf16.msra.mxu1 %v3329_v12  ;;  %3334 = vmatprep.subr.bf16.mxu0 %v3333_v17  ;;  %v3357_v35 = vpack.c.bf16 %v193_v32, %v192_v31  ;;  %v190_v36 = vld [vmem:[%s3555_s15 + $0xe0] sm:$0xff]  ;;  %v194_v38 = vld [vmem:[%s3555_s15 + $0x110] sm:$0xff]  ;;  %v195_v39 = vld [vmem:[%s3555_s15 + $0x118] sm:$0xff] }
  0x1b   : > { %3342 = vmatprep.subr.bf16.mxu1 %v3341_v19  ;;  %v161_v40 = vld [vmem:[%s3555_s15 + $0x68] sm:$0xff]  ;;  %v163_v41 = vld [vmem:[%s3555_s15 + $0x98] sm:$0xff]  ;;  %v3353_v42 = vpack.c.bf16 %v191_v37, %v190_v36  ;;  %v3361_v43 = vpack.c.bf16 %v195_v39, %v194_v38  ;;  %v196_v44 = vld [vmem:[%s3555_s15 + $0x130] sm:$0xff]  ;;  %v1547_v29 = vshrl.u32 %v1546_v28, 7  ;;  %v1552_v31 = vand.u32 127, %v1546_v28 }
  0x1c   : > { %3046 = vmatmul.mubr.msk.f32.vlgmr.msra.gmra.mrb[0].mxu0 %vm204_vm0, %v157_v24  ;;  %v197_v45 = vld [vmem:[%s3555_s15 + $0x138] sm:$0xff]  ;;  %v164_v46 = vld [vmem:[%s3555_s15 + $0xc0] sm:$0xff]  ;;  %v201_v48 = vld [vmem:[%s3555_s15 + $0x168] sm:$0xff] }
  0x1d   : > { %3057 = vmatmul.mubr.msk.f32.vlgmr.msra.gmra.mrb[0].mxu1 %vm204_vm0, %v159_v25  ;;  %3336 = vmatpush3.bf16.msra.mxu0 %v3333_v17  ;;  %v200_v47 = vld [vmem:[%s3555_s15 + $0x160] sm:$0xff]  ;;  %v166_v49 = vld [vmem:[%s3555_s15 + $0xf0] sm:$0xff]  ;;  %v3365_v50 = vpack.c.bf16 %v197_v45, %v196_v44  ;;  %v199_v53 = vld [vmem:[%s3555_s15 + $0x148] sm:$0xff]  ;;  %v1550_v32 = vadd.s32 24, %v1547_v29  ;;  %vm3684_vm7 = vcmp.eq.s32.totalorder %v1547_v29, %v1552_v31 }
  0x1e   : > { %3344 = vmatpush3.bf16.msra.mxu1 %v3341_v19  ;;  %3338 = vmatprep.subr.bf16.mxu0 %v3337_v26  ;;  %v3373_v51 = vpack.c.bf16 %v201_v48, %v200_v47  ;;  %v198_v52 = vld [vmem:[%s3555_s15 + $0x140] sm:$0xff]  ;;  %v202_v54 = vld [vmem:[%s3555_s15 + $0x170] sm:$0xff]  ;;  %v203_v55 = vld [vmem:[%s3555_s15 + $0x178] sm:$0xff] }
  0x1f   : > { %3346 = vmatprep.subr.bf16.mxu1 %v3345_v27  ;;  %3067 = vmatprep.mubr.msk.f32.mxu0 %vm204_vm0, %v160_v30  ;;  %v165_v56 = vld [vmem:[%s3555_s15 + $0xc8] sm:$0xff]  ;;  %v167_v57 = vld [vmem:[%s3555_s15 + $0xf8] sm:$0xff]  ;;  %v3369_v58 = vpack.c.bf16 %v199_v53, %v198_v52  ;;  %v3377_v59 = vpack.c.bf16 %v203_v55, %v202_v54  ;;  %v168_v60 = vld [vmem:[%s3555_s15 + $0x120] sm:$0xff]  ;;  %v1548_v30 = vadd.s32 8, %v1547_v29  ;;  %vm3680_vm6 = vcmp.eq.s32.totalorder %v1550_v32, %v1552_v31 }
  0x20   : > { %3078 = vmatprep.mubr.msk.f32.mxu1 %vm204_vm0, %v162_v33  ;;  %v170_v61 = vld [vmem:[%s3555_s15 + $0x150] sm:$0xff]  ;;  %v169_v62 = vld [vmem:[%s3555_s15 + $0x128] sm:$0xff]  ;;  %v171_v63 = vld [vmem:[%s3555_s15 + $0x158] sm:$0xff] }
  0x21   : > { %3340 = vmatpush3.bf16.msra.mxu0 %v3337_v26  ;;  %v3624_v0 = vld [vmem:[%s4275_s0] sm:$0xff]  ;;  %v153_v7 = vld [vmem:[%s4275_s0 + $0x8] sm:$0xff]  ;;  %v154_v8 = vld [vmem:[%s4275_s0 + $0x10] sm:$0xff]  ;;  %vm3675_vm2 = vcmp.eq.s32.totalorder %v1548_v30, %v1552_v31 }
  0x22   : > { %3348 = vmatpush3.bf16.msra.mxu1 %v3345_v27  ;;  %3350 = vmatprep.subr.bf16.mxu0 %v3349_v34  ;;  %v155_v12 = vld [vmem:[%s4275_s0 + $0x18] sm:$0xff] }
  0x23   : > { %3358 = vmatprep.subr.bf16.mxu1 %v3357_v35 }
  0x24   : > { %3068 = vmatmul.mubr.msk.f32.vlgmr.msra.gmra.mrb[2].mxu0 %vm204_vm0, %v161_v40 }
  0x25   : > { %3079 = vmatmul.mubr.msk.f32.vlgmr.msra.gmra.mrb[2].mxu1 %vm204_vm0, %v163_v41  ;;  %3352 = vmatpush3.bf16.msra.mxu0 %v3349_v34 }
  0x26   : > { %3360 = vmatpush3.bf16.msra.mxu1 %v3357_v35  ;;  %3354 = vmatprep.subr.bf16.mxu0 %v3353_v42 }
  0x27   : > { %3362 = vmatprep.subr.bf16.mxu1 %v3361_v43  ;;  %3089 = vmatprep.mubr.msk.f32.mxu0 %vm204_vm0, %v164_v46 }
  0x28   : > { %3100 = vmatprep.mubr.msk.f32.mxu1 %vm204_vm0, %v166_v49 }
  0x29   : > { %3356 = vmatpush3.bf16.msra.mxu0 %v3353_v42 }
  0x2a   : > { %3364 = vmatpush3.bf16.msra.mxu1 %v3361_v43  ;;  %3366 = vmatprep.subr.bf16.mxu0 %v3365_v50  ;;  %v1549_v43 = vadd.s32 16, %v1547_v29 }
  0x2b   : > { %3374 = vmatprep.subr.bf16.mxu1 %v3373_v51 }
  0x2c   : > { %3090 = vmatmul.mubr.msk.f32.vlgmr.msra.gmra.mrb[4].mxu0 %vm204_vm0, %v165_v56  ;;  %vm3693_vm11 = vcmp.eq.s32.totalorder %v1549_v43, %v1552_v31 }
  0x2d   : > { %3101 = vmatmul.mubr.msk.f32.vlgmr.msra.gmra.mrb[4].mxu1 %vm204_vm0, %v167_v57  ;;  %3368 = vmatpush3.bf16.msra.mxu0 %v3365_v50 }
  0x2e   : > { %3376 = vmatpush3.bf16.msra.mxu1 %v3373_v51  ;;  %3370 = vmatprep.subr.bf16.mxu0 %v3369_v58 }
  0x2f   : > { %3378 = vmatprep.subr.bf16.mxu1 %v3377_v59  ;;  %3111 = vmatprep.mubr.msk.f32.mxu0 %vm204_vm0, %v168_v60 }
  0x30   : > { %3122 = vmatprep.mubr.msk.f32.mxu1 %vm204_vm0, %v170_v61 }
  0x31   : > { %3372 = vmatpush3.bf16.msra.mxu0 %v3369_v58 }
  0x32   : > { %3380 = vmatpush3.bf16.msra.mxu1 %v3377_v59 }
  0x34   : > { %3112 = vmatmul.mubr.msk.f32.vlgmr.msra.gmra.mrb[6].mxu0 %vm204_vm0, %v169_v62 }
  0x35   : > { %3123 = vmatmul.mubr.msk.f32.vlgmr.msra.gmra.mrb[6].mxu1 %vm204_vm0, %v171_v63  ;;  %3129 = vmatprep.mubr.msk.f32.mxu0 %vm853_vm1, %v3624_v0 }
  0x36   : > { %3139 = vmatprep.mubr.msk.f32.mxu1 %vm853_vm1, %v3624_v0 }
  0xef   : > { %v3047_v1 = vpop.f32.mrb[0].mxu0 }
  0xf0   : > { %v3058_v2 = vpop.f32.mrb[0].mxu1  ;;  %v277_v3 = vpop.f32.mrb[1].mxu0 }
  0xf1   : > { %v3381_v4 = vpack.c.bf16 %v3047_v1, %v277_v3  ;;  %v358_v5 = vpop.f32.mrb[1].mxu1 }
  0xf2   : > { %v3385_v6 = vpack.c.bf16 %v3058_v2, %v358_v5 }
  0xf3   : > { %3382 = vmatprep.subr.bf16.mxu0 %v3381_v4 }
  0xf4   : > { %3386 = vmatprep.subr.bf16.mxu1 %v3385_v6  ;;  %3384 = vmatpush3.bf16.msra.mxu0 %v3381_v4 }
  0xf5   : > { %3388 = vmatpush3.bf16.msra.mxu1 %v3385_v6 }
  0xf7   : > { %3130 = vmatmul.mubr.msk.f32.vlgmr.msra.gmra.mrb[8].mxu0 %vm853_vm1, %v153_v7  ;;  %v3069_v9 = vpop.f32.mrb[2].mxu0 }
  0xf8   : > { %3140 = vmatmul.mubr.msk.f32.vlgmr.msra.gmra.mrb[8].mxu1 %vm853_vm1, %v153_v7  ;;  %v3080_v10 = vpop.f32.mrb[2].mxu1  ;;  %v439_v11 = vpop.f32.mrb[3].mxu0  ;;  %3132 = vmatprep.mubr.msk.f32.mxu0 %vm853_vm1, %v154_v8 }
  0xf9   : > { %v3389_v13 = vpack.c.bf16 %v3069_v9, %v439_v11  ;;  %v520_v14 = vpop.f32.mrb[3].mxu1  ;;  %3142 = vmatprep.mubr.msk.f32.mxu1 %vm853_vm1, %v154_v8 }
  0xfa   : > { %v3393_v15 = vpack.c.bf16 %v3080_v10, %v520_v14 }
  0xfb   : > { %3133 = vmatmul.mubr.msk.f32.gmra.mrb[10].mxu0 %vm853_vm1, %v155_v12  ;;  %3390 = vmatprep.subr.bf16.mxu0 %v3389_v13 }
  0xfc   : > { %3143 = vmatmul.mubr.msk.f32.gmra.mrb[10].mxu1 %vm853_vm1, %v155_v12  ;;  %3394 = vmatprep.subr.bf16.mxu1 %v3393_v15 }
  0xfd   : > { %3392 = vmatpush3.bf16.msra.mxu0 %v3389_v13  ;;  %3396 = vmatpush3.bf16.msra.mxu1 %v3393_v15 }
  0xfe   : > { %3149 = vmatprep.mubr.msk.f32.mxu0 %vm853_vm1, %v3624_v0  ;;  %3159 = vmatprep.mubr.msk.f32.mxu1 %vm853_vm1, %v3624_v0 }
  0xff   : > { %v3091_v16 = vpop.f32.mrb[4].mxu0 }
 0x100   : > { %3150 = vmatmul.mubr.msk.f32.vlgmr.msra.gmra.mrb[12].mxu0 %vm853_vm1, %v153_v7  ;;  %3160 = vmatmul.mubr.msk.f32.vlgmr.msra.gmra.mrb[12].mxu1 %vm853_vm1, %v153_v7  ;;  %v3102_v17 = vpop.f32.mrb[4].mxu1  ;;  %v601_v18 = vpop.f32.mrb[5].mxu0 }
 0x101   : > { %v3397_v19 = vpack.c.bf16 %v3091_v16, %v601_v18  ;;  %v682_v20 = vpop.f32.mrb[5].mxu1  ;;  %3152 = vmatprep.mubr.msk.f32.mxu0 %vm853_vm1, %v154_v8  ;;  %3162 = vmatprep.mubr.msk.f32.mxu1 %vm853_vm1, %v154_v8 }
 0x102   : > { %v3401_v21 = vpack.c.bf16 %v3102_v17, %v682_v20 }
 0x103   : > { %3398 = vmatprep.subr.bf16.mxu0 %v3397_v19 }
 0x104   : > { %3153 = vmatmul.mubr.msk.f32.gmra.mrb[14].mxu0 %vm853_vm1, %v155_v12  ;;  %3163 = vmatmul.mubr.msk.f32.gmra.mrb[14].mxu1 %vm853_vm1, %v155_v12 }
 0x105   : > { %3402 = vmatprep.subr.bf16.mxu1 %v3401_v21  ;;  %3400 = vmatpush3.bf16.msra.mxu0 %v3397_v19 }
 0x106   : > { %3404 = vmatpush3.bf16.msra.mxu1 %v3401_v21  ;;  %3169 = vmatprep.mubr.msk.f32.mxu0 %vm853_vm1, %v3624_v0 }
 0x107   : > { %3179 = vmatprep.mubr.msk.f32.mxu1 %vm853_vm1, %v3624_v0  ;;  %v3113_v22 = vpop.f32.mrb[6].mxu0 }
 0x108   : > { %3170 = vmatmul.mubr.msk.f32.vlgmr.msra.gmra.mrb[16].mxu0 %vm853_vm1, %v153_v7  ;;  %v3124_v23 = vpop.f32.mrb[6].mxu1  ;;  %v763_v24 = vpop.f32.mrb[7].mxu0 }
 0x109   : > { %3180 = vmatmul.mubr.msk.f32.vlgmr.msra.gmra.mrb[16].mxu1 %vm853_vm1, %v153_v7  ;;  %v3405_v25 = vpack.c.bf16 %v3113_v22, %v763_v24  ;;  %v844_v26 = vpop.f32.mrb[7].mxu1  ;;  %3172 = vmatprep.mubr.msk.f32.mxu0 %vm853_vm1, %v154_v8 }
 0x10a   : > { %v3409_v27 = vpack.c.bf16 %v3124_v23, %v844_v26  ;;  %3182 = vmatprep.mubr.msk.f32.mxu1 %vm853_vm1, %v154_v8 }
 0x10b   : > { %3406 = vmatprep.subr.bf16.mxu0 %v3405_v25 }
 0x10c   : > { %3173 = vmatmul.mubr.msk.f32.gmra.mrb[18].mxu0 %vm853_vm1, %v155_v12  ;;  %3410 = vmatprep.subr.bf16.mxu1 %v3409_v27 }
 0x10d   : > { %3183 = vmatmul.mubr.msk.f32.gmra.mrb[18].mxu1 %vm853_vm1, %v155_v12  ;;  %3408 = vmatpush3.bf16.msra.mxu0 %v3405_v25 }
 0x10e   : > { %3412 = vmatpush3.bf16.msra.mxu1 %v3409_v27  ;;  %3189 = vmatprep.mubr.msk.f32.mxu0 %vm853_vm1, %v3624_v0 }
 0x10f   : > { %3199 = vmatprep.mubr.msk.f32.mxu1 %vm853_vm1, %v3624_v0 }
 0x110   : > { %3190 = vmatmul.mubr.msk.f32.vlgmr.msra.gmra.mrb[20].mxu0 %vm853_vm1, %v153_v7 }
 0x111   : > { %3200 = vmatmul.mubr.msk.f32.vlgmr.msra.gmra.mrb[20].mxu1 %vm853_vm1, %v153_v7  ;;  %3192 = vmatprep.mubr.msk.f32.mxu0 %vm853_vm1, %v154_v8 }
 0x112   : > { %3202 = vmatprep.mubr.msk.f32.mxu1 %vm853_vm1, %v154_v8 }
 0x114   : > { %3193 = vmatmul.mubr.msk.f32.gmra.mrb[22].mxu0 %vm853_vm1, %v155_v12 }
 0x115   : > { %3203 = vmatmul.mubr.msk.f32.gmra.mrb[22].mxu1 %vm853_vm1, %v155_v12 }
 0x1ca   : > { %v3131_v33 = vpop.f32.mrb[8].mxu0 }
 0x1cb   : > { %vm1558_vm3 = vcmp.ge.f32.partialorder %v3131_v33, 0.0  ;;  %v1590_v35 = vmul.f32 0.2, %v3131_v33  ;;  %v3141_v36 = vpop.f32.mrb[8].mxu1  ;;  %v932_v37 = vpop.f32.mrb[9].mxu0 }
 0x1cc   : > { %vm1562_vm4 = vcmp.ge.f32.partialorder %v3141_v36, 0.0  ;;  %v1594_v38 = vmul.f32 0.2, %v3141_v36  ;;  %vm1557_vm5 = vcmp.ge.f32.partialorder %v932_v37, 0.0  ;;  %v1589_v39 = vmul.f32 0.2, %v932_v37 }
 0x1cd   : > { %v1622_v40 = vsel %vm1558_vm3, %v3131_v33, %v1590_v35  ;;  %v1017_v41 = vpop.f32.mrb[9].mxu1 }
 0x1ce   : > { %v1654_v45 = vmax.f32 %v1622_v40, 0.0  ;;  %v1626_v46 = vsel %vm1562_vm4, %v3141_v36, %v1594_v38  ;;  %v1621_v47 = vsel %vm1557_vm5, %v932_v37, %v1589_v39  ;;  %vm1561_vm8 = vcmp.ge.f32.partialorder %v1017_v41, 0.0  ;;  %v3134_v48 = vpop.f32.mrb[10].mxu0 }
 0x1cf   : > { %v1658_v49 = vmax.f32 %v1626_v46, 0.0  ;;  %v1653_v50 = vmax.f32 %v1621_v47, 0.0  ;;  %v1593_v51 = vmul.f32 0.2, %v1017_v41  ;;  %vm1560_vm9 = vcmp.ge.f32.partialorder %v3134_v48, 0.0  ;;  %v3144_v52 = vpop.f32.mrb[10].mxu1 }
 0x1d0   : > { %v1686_v53 = vmin.f32 %v1654_v45, 1.0  ;;  %v1592_v54 = vmul.f32 0.2, %v3134_v48  ;;  %vm1564_vm10 = vcmp.ge.f32.partialorder %v3144_v52, 0.0  ;;  %v1596_v55 = vmul.f32 0.2, %v3144_v52 }
 0x1d1   : > { %v1690_v56 = vmin.f32 %v1658_v49, 1.0  ;;  %v1685_v57 = vmin.f32 %v1653_v50, 1.0  ;;  %v1625_v58 = vsel %vm1561_vm8, %v1017_v41, %v1593_v51  ;;  %v942_v59 = vpop.f32.mrb[11].mxu0  ;;  %v1027_v61 = vpop.f32.mrb[11].mxu1 }
 0x1d2   : > { %v3699_v62 = vsel %vm3675_vm2, 1.0, %v1686_v53  ;;  %v1657_v63 = vmax.f32 %v1625_v58, 0.0  ;;  %v1624_v0 = vsel %vm1560_vm9, %v3134_v48, %v1592_v54  ;;  %v1628_v1 = vsel %vm1564_vm10, %v3144_v52, %v1596_v55 }
 0x1d3   : > { %2534 = vst.msk [vmem:[%s3691_s27 + $0x8] sm:$0xff] %vm204_vm0, %v3699_v62  ;;  %v3706_v2 = vsel %vm3675_vm2, 1.0, %v1690_v56  ;;  %v1656_v3 = vmax.f32 %v1624_v0, 0.0  ;;  %v1660_v4 = vmax.f32 %v1628_v1, 0.0  ;;  %vm1559_vm12 = vcmp.ge.f32.partialorder %v942_v59, 0.0  ;;  %v3151_v5 = vpop.f32.mrb[12].mxu0 }
 0x1d4   : > { %v3161_v6 = vpop.f32.mrb[12].mxu1  ;;  %2538 = vst.msk [vmem:[%s3691_s27 + $0x48] sm:$0xff] %vm204_vm0, %v3706_v2  ;;  %v1689_v7 = vmin.f32 %v1657_v63, 1.0  ;;  %v1591_v8 = vmul.f32 0.2, %v942_v59  ;;  %vm1563_vm13 = vcmp.ge.f32.partialorder %v1027_v61, 0.0 }
 0x1d5   : > { %v1595_v9 = vmul.f32 0.2, %v1027_v61  ;;  %v1688_v10 = vmin.f32 %v1656_v3, 1.0  ;;  %v1692_v11 = vmin.f32 %v1660_v4, 1.0  ;;  %v1725_v12 = vsel %vm3684_vm7, 1.0, %v1685_v57  ;;  %v1102_v14 = vpop.f32.mrb[13].mxu0 }
 0x1d6   : > { %vm1566_vm15 = vcmp.ge.f32.partialorder %v3151_v5, 0.0  ;;  %v1187_v15 = vpop.f32.mrb[13].mxu1  ;;  %v1623_v16 = vsel %vm1559_vm12, %v942_v59, %v1591_v8  ;;  %v3413_v18 = vpack.c.bf16 %v3699_v62, %v1725_v12  ;;  %3213 = vmatprep.mubr.msk.f32.mxu0 %vm204_vm0, %v1725_v12  ;;  %2533 = vst.msk [vmem:[%s3691_s27] sm:$0xff] %vm204_vm0, %v1725_v12  ;;  %v1729_v19 = vsel %vm3684_vm7, 1.0, %v1689_v7 }
 0x1d7   : > { %v1627_v17 = vsel %vm1563_vm13, %v1027_v61, %v1595_v9  ;;  %v3727_v20 = vsel %vm3680_vm6, 1.0, %v1688_v10  ;;  %v3731_v21 = vsel %vm3680_vm6, 1.0, %v1692_v11  ;;  %v1655_v22 = vmax.f32 %v1623_v16, 0.0  ;;  %3227 = vmatprep.mubr.msk.f32.mxu1 %vm204_vm0, %v1729_v19  ;;  %2537 = vst.msk [vmem:[%s3691_s27 + $0x40] sm:$0xff] %vm204_vm0, %v1729_v19  ;;  %v3154_v24 = vpop.f32.mrb[14].mxu0  ;;  %v3164_v25 = vpop.f32.mrb[14].mxu1 }
 0x1d8   : > { %v1659_v23 = vmax.f32 %v1627_v17, 0.0  ;;  %2536 = vst.msk [vmem:[%s3691_s27 + $0x18] sm:$0xff] %vm204_vm0, %v3727_v20  ;;  %2540 = vst.msk [vmem:[%s3691_s27 + $0x58] sm:$0xff] %vm204_vm0, %v3731_v21  ;;  %v3425_v26 = vpack.c.bf16 %v3706_v2, %v1729_v19  ;;  %3415 = vmatprep.subr.msk.bf16.mxu0 %vm3715_vm14, %v3413_v18  ;;  %v1598_v27 = vmul.f32 0.2, %v3151_v5  ;;  %vm1570_vm1 = vcmp.ge.f32.partialorder %v3161_v6, 0.0 }
 0x1d9   : > { %v1602_v28 = vmul.f32 0.2, %v3161_v6  ;;  %v1112_v29 = vpop.f32.mrb[15].mxu0  ;;  %v1687_v30 = vmin.f32 %v1655_v22, 1.0  ;;  %3418 = vmatpush3.bf16.xpose.msk.msra.mxu0 %vm3715_vm14, %v3413_v18  ;;  %vm1565_vm3 = vcmp.ge.f32.partialorder %v1102_v14, 0.0  ;;  %v3747_v33 = vpop.f32.mrb[15].mxu1 }
 0x1da   : > { %v1691_v31 = vmin.f32 %v1659_v23, 1.0  ;;  %v1597_v32 = vmul.f32 0.2, %v1102_v14  ;;  %3427 = vmatprep.subr.msk.bf16.mxu1 %vm3715_vm14, %v3425_v26  ;;  %v1630_v35 = vsel %vm1566_vm15, %v3151_v5, %v1598_v27  ;;  %vm1569_vm4 = vcmp.ge.f32.partialorder %v1187_v15, 0.0 }
 0x1db   : > { %v1634_v36 = vsel %vm1570_vm1, %v3161_v6, %v1602_v28  ;;  %v1601_v37 = vmul.f32 0.2, %v1187_v15  ;;  %v3754_v38 = vsel %vm3693_vm11, 1.0, %v1687_v30  ;;  %3430 = vmatpush3.bf16.xpose.msk.msra.mxu1 %vm3715_vm14, %v3425_v26  ;;  %v1662_v40 = vmax.f32 %v1630_v35, 0.0  ;;  %v3762_v43 = vpop.f32.mrb[16].mxu0 }
 0x1dc   : > { %v3758_v39 = vsel %vm3693_vm11, 1.0, %v1691_v31  ;;  %v1666_v41 = vmax.f32 %v1634_v36, 0.0  ;;  %2535 = vst.msk [vmem:[%s3691_s27 + $0x10] sm:$0xff] %vm204_vm0, %v3754_v38  ;;  %v1629_v45 = vsel %vm1565_vm3, %v1102_v14, %v1597_v32  ;;  %v3419_v47 = vpack.c.bf16 %v3727_v20, %v3754_v38  ;;  %v3775_v49 = vpop.f32.mrb[16].mxu1  ;;  %v3777_v50 = vpop.f32.mrb[17].mxu0 }
 0x1dd   : > { %2539 = vst.msk [vmem:[%s3691_s27 + $0x50] sm:$0xff] %vm204_vm0, %v3758_v39  ;;  %v1633_v46 = vsel %vm1569_vm4, %v1187_v15, %v1601_v37  ;;  %v3431_v48 = vpack.c.bf16 %v3731_v21, %v3758_v39  ;;  %v1694_v51 = vmin.f32 %v1662_v40, 1.0  ;;  %v1661_v53 = vmax.f32 %v1629_v45, 0.0  ;;  %v3779_v55 = vpop.f32.mrb[17].mxu1 }
 0x1de   : > { %v1698_v52 = vmin.f32 %v1666_v41, 1.0  ;;  %v1665_v54 = vmax.f32 %v1633_v46, 0.0  ;;  %3421 = vmatprep.subr.msk.bf16.mxu0 %vm3715_vm14, %v3419_v47  ;;  %vm1568_vm5 = vcmp.ge.f32.partialorder %v3154_v24, 0.0  ;;  %v1600_v56 = vmul.f32 0.2, %v3154_v24 }
 0x1df   : > { %3433 = vmatprep.subr.msk.bf16.mxu1 %vm3715_vm14, %v3431_v48  ;;  %vm1572_vm8 = vcmp.ge.f32.partialorder %v3164_v25, 0.0  ;;  %v1604_v57 = vmul.f32 0.2, %v3164_v25  ;;  %v3787_v58 = vsel %vm3675_vm2, 1.0, %v1694_v51  ;;  %v1693_v61 = vmin.f32 %v1661_v53, 1.0  ;;  %v3793_v0 = vpop.f32.mrb[18].mxu0 }
 0x1e0   : > { %v3791_v59 = vsel %vm3675_vm2, 1.0, %v1698_v52  ;;  %v1697_v63 = vmin.f32 %v1665_v54, 1.0  ;;  %2542 = vst.msk [vmem:[%s3691_s27 + $0x88] sm:$0xff] %vm204_vm0, %v3787_v58  ;;  %v1632_v1 = vsel %vm1568_vm5, %v3154_v24, %v1600_v56  ;;  %vm1567_vm9 = vcmp.ge.f32.partialorder %v1112_v29, 0.0  ;;  %v3801_v5 = vpop.f32.mrb[18].mxu1  ;;  %v3803_v6 = vpop.f32.mrb[19].mxu0 }
 0x1e1   : > { %2546 = vst.msk [vmem:[%s3691_s27 + $0xc8] sm:$0xff] %vm204_vm0, %v3791_v59  ;;  %v1636_v3 = vsel %vm1572_vm8, %v3164_v25, %v1604_v57  ;;  %v1599_v4 = vmul.f32 0.2, %v1112_v29  ;;  %v3807_v7 = vsel %vm3684_vm7, 1.0, %v1693_v61  ;;  %3424 = vmatpush3.bf16.xpose.msk.msra.mxu0 %vm3715_vm14, %v3419_v47  ;;  %v1664_v9 = vmax.f32 %v1632_v1, 0.0  ;;  %v3815_v11 = vpop.f32.mrb[19].mxu1 }
 0x1e2   : > { %v3811_v8 = vsel %vm3684_vm7, 1.0, %v1697_v63  ;;  %v1668_v10 = vmax.f32 %v1636_v3, 0.0  ;;  %2541 = vst.msk [vmem:[%s3691_s27 + $0x80] sm:$0xff] %vm204_vm0, %v3807_v7  ;;  %vm1571_vm10 = vcmp.ge.f32.partialorder %v3747_v33, 0.0  ;;  %v1603_v14 = vmul.f32 0.2, %v3747_v33 }
 0x1e3   : > { %2545 = vst.msk [vmem:[%s3691_s27 + $0xc0] sm:$0xff] %vm204_vm0, %v3811_v8  ;;  %v1631_v12 = vsel %vm1567_vm9, %v1112_v29, %v1599_v4  ;;  %v3437_v15 = vpack.c.bf16 %v3787_v58, %v3807_v7  ;;  %3436 = vmatpush3.bf16.xpose.msk.msra.mxu1 %vm3715_vm14, %v3431_v48  ;;  %v1696_v16 = vmin.f32 %v1664_v9, 1.0  ;;  %v3449_v19 = vpack.c.bf16 %v3791_v59, %v3811_v8  ;;  %v3831_v22 = vpop.f32.mrb[20].mxu0 }
 0x1e4   : > { %v1700_v17 = vmin.f32 %v1668_v10, 1.0  ;;  %v1663_v18 = vmax.f32 %v1631_v12, 0.0  ;;  %v1635_v23 = vsel %vm1571_vm10, %v3747_v33, %v1603_v14  ;;  %vm1574_vm12 = vcmp.ge.f32.partialorder %v3762_v43, 0.0  ;;  %v3839_v25 = vpop.f32.mrb[20].mxu1  ;;  %v3841_v26 = vpop.f32.mrb[21].mxu0 }
 0x1e5   : > { %3439 = vmatprep.subr.msk.bf16.mxu0 %vm3715_vm14, %v3437_v15  ;;  %v1606_v24 = vmul.f32 0.2, %v3762_v43  ;;  %vm1578_vm13 = vcmp.ge.f32.partialorder %v3775_v49, 0.0  ;;  %v3845_v27 = vsel %vm3680_vm6, 1.0, %v1696_v16  ;;  %v1667_v30 = vmax.f32 %v1635_v23, 0.0  ;;  %3451 = vmatprep.subr.msk.bf16.mxu1 %vm3715_vm14, %v3449_v19  ;;  %v3853_v31 = vpop.f32.mrb[21].mxu1 }
 0x1e6   : > { %v3849_v28 = vsel %vm3680_vm6, 1.0, %v1700_v17  ;;  %v1695_v29 = vmin.f32 %v1663_v18, 1.0  ;;  %2544 = vst.msk [vmem:[%s3691_s27 + $0x98] sm:$0xff] %vm204_vm0, %v3845_v27  ;;  %v1610_v33 = vmul.f32 0.2, %v3775_v49  ;;  %vm1573_vm15 = vcmp.ge.f32.partialorder %v3777_v50, 0.0 }
 0x1e7   : > { %2548 = vst.msk [vmem:[%s3691_s27 + $0xd8] sm:$0xff] %vm204_vm0, %v3849_v28  ;;  %v1638_v32 = vsel %vm1574_vm12, %v3762_v43, %v1606_v24  ;;  %v1605_v35 = vmul.f32 0.2, %v3777_v50  ;;  %v1699_v37 = vmin.f32 %v1667_v30, 1.0  ;;  %vm1577_vm1 = vcmp.ge.f32.partialorder %v3779_v55, 0.0  ;;  %v3870_v41 = vpop.f32.mrb[22].mxu0 }
 0x1e8   : > { %v3867_v36 = vsel %vm3693_vm11, 1.0, %v1695_v29  ;;  %v1670_v40 = vmax.f32 %v1638_v32, 0.0  ;;  %3214 = vmatmul.mubr.msk.f32.vlgmr.msra.gmra.mrb[24].mxu0 %vm204_vm0, %v3699_v62  ;;  %v1642_v43 = vsel %vm1578_vm13, %v3775_v49, %v1610_v33  ;;  %v1609_v46 = vmul.f32 0.2, %v3779_v55  ;;  %v3884_v48 = vpop.f32.mrb[22].mxu1  ;;  %v3886_v51 = vpop.f32.mrb[23].mxu0 }
 0x1e9   : > { %2543 = vst.msk [vmem:[%s3691_s27 + $0x90] sm:$0xff] %vm204_vm0, %v3867_v36  ;;  %v1637_v45 = vsel %vm1573_vm15, %v3777_v50, %v1605_v35  ;;  %v3443_v47 = vpack.c.bf16 %v3845_v27, %v3867_v36  ;;  %v3890_v52 = vsel %vm3693_vm11, 1.0, %v1699_v37  ;;  %3216 = vmatprep.mubr.msk.f32.mxu0 %vm204_vm0, %v3754_v38  ;;  %3442 = vmatpush3.bf16.xpose.msk.msra.mxu0 %vm3715_vm14, %v3437_v15  ;;  %v1674_v49 = vmax.f32 %v1642_v43, 0.0  ;;  %v3896_v53 = vpop.f32.mrb[23].mxu1 }
 0x1ea   : > { %v1702_v62 = vmin.f32 %v1670_v40, 1.0  ;;  %v1669_v50 = vmax.f32 %v1637_v45, 0.0  ;;  %2547 = vst.msk [vmem:[%s3691_s27 + $0xd0] sm:$0xff] %vm204_vm0, %v3890_v52  ;;  %3228 = vmatmul.mubr.msk.f32.vlgmr.msra.gmra.mrb[24].mxu1 %vm204_vm0, %v3706_v2  ;;  %v1641_v54 = vsel %vm1577_vm1, %v3779_v55, %v1609_v46  ;;  %v3455_v38 = vpack.c.bf16 %v3849_v28, %v3890_v52 }
 0x1eb   : > { %3445 = vmatprep.subr.msk.bf16.mxu0 %vm3715_vm14, %v3443_v47  ;;  %vm1576_vm3 = vcmp.ge.f32.partialorder %v3793_v0, 0.0  ;;  %v1608_v56 = vmul.f32 0.2, %v3793_v0  ;;  %3230 = vmatprep.mubr.msk.f32.mxu1 %vm204_vm0, %v3758_v39  ;;  %v1706_v55 = vmin.f32 %v1674_v49, 1.0  ;;  %v1673_v61 = vmax.f32 %v1641_v54, 0.0 }
 0x1ec   : > { %3454 = vmatpush3.bf16.xpose.msk.msra.mxu1 %vm3715_vm14, %v3449_v19  ;;  %v3918_v2 = vsel %vm3675_vm2, 1.0, %v1702_v62  ;;  %v1701_v57 = vmin.f32 %v1669_v50, 1.0  ;;  %3217 = vmatmul.mubr.msk.f32.gmra.mrb[26].mxu0 %vm204_vm0, %v3727_v20  ;;  %vm1580_vm4 = vcmp.ge.f32.partialorder %v3801_v5, 0.0  ;;  %v1612_v63 = vmul.f32 0.2, %v3801_v5 }
 0x1ed   : > { %2550 = vst.msk [vmem:[%s3691_s27 + $0x108] sm:$0xff] %vm204_vm0, %v3918_v2  ;;  %3457 = vmatprep.subr.msk.bf16.mxu1 %vm3715_vm14, %v3455_v38  ;;  %v1640_v39 = vsel %vm1576_vm3, %v3793_v0, %v1608_v56  ;;  %vm1575_vm5 = vcmp.ge.f32.partialorder %v3803_v6, 0.0  ;;  %v3933_v1 = vsel %vm3675_vm2, 1.0, %v1706_v55  ;;  %v1705_v20 = vmin.f32 %v1673_v61, 1.0  ;;  %3241 = vmatprep.mubr.msk.f32.mxu0 %vm204_vm0, %v3807_v7 }
 0x1ee   : > { %v3937_v3 = vsel %vm3684_vm7, 1.0, %v1701_v57  ;;  %v1672_v0 = vmax.f32 %v1640_v39, 0.0  ;;  %2554 = vst.msk [vmem:[%s3691_s27 + $0x148] sm:$0xff] %vm204_vm0, %v3933_v1  ;;  %3231 = vmatmul.mubr.msk.f32.gmra.mrb[26].mxu1 %vm204_vm0, %v3731_v21  ;;  %v1644_v4 = vsel %vm1580_vm4, %v3801_v5, %v1612_v63  ;;  %v1607_v9 = vmul.f32 0.2, %v3803_v6 }
 0x1ef   : > { %2549 = vst.msk [vmem:[%s3691_s27 + $0x100] sm:$0xff] %vm204_vm0, %v3937_v3  ;;  %vm1579_vm8 = vcmp.ge.f32.partialorder %v3815_v11, 0.0  ;;  %v1611_v10 = vmul.f32 0.2, %v3815_v11  ;;  %v3955_v7 = vsel %vm3684_vm7, 1.0, %v1705_v20  ;;  %3255 = vmatprep.mubr.msk.f32.mxu1 %vm204_vm0, %v3811_v8  ;;  %v1676_v14 = vmax.f32 %v1644_v4, 0.0 }
 0x1f0   : > { %v1704_v12 = vmin.f32 %v1672_v0, 1.0  ;;  %v3461_v21 = vpack.c.bf16 %v3918_v2, %v3937_v3  ;;  %2553 = vst.msk [vmem:[%s3691_s27 + $0x140] sm:$0xff] %vm204_vm0, %v3955_v7  ;;  %v1639_v5 = vsel %vm1575_vm5, %v3803_v6, %v1607_v9  ;;  %v3473_v16 = vpack.c.bf16 %v3933_v1, %v3955_v7 }
 0x1f1   : > { %v1643_v15 = vsel %vm1579_vm8, %v3815_v11, %v1611_v10  ;;  %vm1582_vm9 = vcmp.ge.f32.partialorder %v3831_v22, 0.0  ;;  %3448 = vmatpush3.bf16.xpose.msk.msra.mxu0 %vm3715_vm14, %v3443_v47  ;;  %v1708_v17 = vmin.f32 %v1676_v14, 1.0  ;;  %v1671_v18 = vmax.f32 %v1639_v5, 0.0 }
 0x1f2   : > { %v3975_v8 = vsel %vm3680_vm6, 1.0, %v1704_v12  ;;  %v1675_v19 = vmax.f32 %v1643_v15, 0.0  ;;  %3463 = vmatprep.subr.msk.bf16.mxu0 %vm3715_vm14, %v3461_v21  ;;  %v1614_v6 = vmul.f32 0.2, %v3831_v22  ;;  %vm1586_vm10 = vcmp.ge.f32.partialorder %v3839_v25, 0.0 }
 0x1f3   : > { %2552 = vst.msk [vmem:[%s3691_s27 + $0x118] sm:$0xff] %vm204_vm0, %v3975_v8  ;;  %v1618_v11 = vmul.f32 0.2, %v3839_v25  ;;  %vm1581_vm12 = vcmp.ge.f32.partialorder %v3841_v26, 0.0  ;;  %v3990_v23 = vsel %vm3680_vm6, 1.0, %v1708_v17  ;;  %v1703_v24 = vmin.f32 %v1671_v18, 1.0 }
 0x1f4   : > { %3460 = vmatpush3.bf16.xpose.msk.msra.mxu1 %vm3715_vm14, %v3455_v38  ;;  %v1707_v29 = vmin.f32 %v1675_v19, 1.0  ;;  %v1613_v30 = vmul.f32 0.2, %v3841_v26  ;;  %2556 = vst.msk [vmem:[%s3691_s27 + $0x158] sm:$0xff] %vm204_vm0, %v3990_v23  ;;  %v1646_v32 = vsel %vm1582_vm9, %v3831_v22, %v1614_v6  ;;  %vm1585_vm13 = vcmp.ge.f32.partialorder %v3853_v31, 0.0 }
 0x1f5   : > { %3475 = vmatprep.subr.msk.bf16.mxu1 %vm3715_vm14, %v3473_v16  ;;  %v1650_v33 = vsel %vm1586_vm10, %v3839_v25, %v1618_v11  ;;  %v1617_v35 = vmul.f32 0.2, %v3853_v31  ;;  %v4006_v37 = vsel %vm3693_vm11, 1.0, %v1703_v24  ;;  %v1678_v43 = vmax.f32 %v1646_v32, 0.0 }
 0x1f6   : > { %v4010_v40 = vsel %vm3693_vm11, 1.0, %v1707_v29  ;;  %v1682_v45 = vmax.f32 %v1650_v33, 0.0  ;;  %2551 = vst.msk [vmem:[%s3691_s27 + $0x110] sm:$0xff] %vm204_vm0, %v4006_v37  ;;  %v1645_v22 = vsel %vm1581_vm12, %v3841_v26, %v1613_v30  ;;  %v3467_v46 = vpack.c.bf16 %v3975_v8, %v4006_v37 }
 0x1f7   : > { %2555 = vst.msk [vmem:[%s3691_s27 + $0x150] sm:$0xff] %vm204_vm0, %v4010_v40  ;;  %v1649_v25 = vsel %vm1585_vm13, %v3853_v31, %v1617_v35  ;;  %v3479_v47 = vpack.c.bf16 %v3990_v23, %v4010_v40  ;;  %v1710_v62 = vmin.f32 %v1678_v43, 1.0  ;;  %v1677_v50 = vmax.f32 %v1645_v22, 0.0 }
 0x1f8   : > { %v1714_v49 = vmin.f32 %v1682_v45, 1.0  ;;  %v1681_v54 = vmax.f32 %v1649_v25, 0.0  ;;  %3242 = vmatmul.mubr.msk.f32.vlgmr.msra.gmra.mrb[28].mxu0 %vm204_vm0, %v3787_v58  ;;  %vm1584_vm15 = vcmp.ge.f32.partialorder %v3870_v41, 0.0  ;;  %v1616_v26 = vmul.f32 0.2, %v3870_v41 }
 0x1f9   : > { %vm1588_vm1 = vcmp.ge.f32.partialorder %v3884_v48, 0.0  ;;  %v1620_v31 = vmul.f32 0.2, %v3884_v48  ;;  %3244 = vmatprep.mubr.msk.f32.mxu0 %vm204_vm0, %v3867_v36  ;;  %3466 = vmatpush3.bf16.xpose.msk.msra.mxu0 %vm3715_vm14, %v3461_v21  ;;  %v4038_v38 = vsel %vm3675_vm2, 1.0, %v1710_v62  ;;  %v1709_v56 = vmin.f32 %v1677_v50, 1.0 }
 0x1fa   : > { %v4042_v58 = vsel %vm3675_vm2, 1.0, %v1714_v49  ;;  %v1713_v55 = vmin.f32 %v1681_v54, 1.0  ;;  %2558 = vst.msk [vmem:[%s3691_s27 + $0x188] sm:$0xff] %vm204_vm0, %v4038_v38  ;;  %3469 = vmatprep.subr.msk.bf16.mxu0 %vm3715_vm14, %v3467_v46  ;;  %v1648_v36 = vsel %vm1584_vm15, %v3870_v41, %v1616_v26  ;;  %vm1583_vm3 = vcmp.ge.f32.partialorder %v3886_v51, 0.0 }
 0x1fb   : > { %3256 = vmatmul.mubr.msk.f32.vlgmr.msra.gmra.mrb[28].mxu1 %vm204_vm0, %v3791_v59  ;;  %2562 = vst.msk [vmem:[%s3691_s27 + $0x1c8] sm:$0xff] %vm204_vm0, %v4042_v58  ;;  %v1652_v57 = vsel %vm1588_vm1, %v3884_v48, %v1620_v31  ;;  %v1615_v61 = vmul.f32 0.2, %v3886_v51  ;;  %v1749_v59 = vsel %vm3684_vm7, 1.0, %v1709_v56  ;;  %v1680_v63 = vmax.f32 %v1648_v36, 0.0 }
 0x1fc   : > { %3258 = vmatprep.mubr.msk.f32.mxu1 %vm204_vm0, %v3890_v52  ;;  %3478 = vmatpush3.bf16.xpose.msk.msra.mxu1 %vm3715_vm14, %v3473_v16  ;;  %v1753_v39 = vsel %vm3684_vm7, 1.0, %v1713_v55  ;;  %v1684_v41 = vmax.f32 %v1652_v57, 0.0  ;;  %2557 = vst.msk [vmem:[%s3691_s27 + $0x180] sm:$0xff] %vm204_vm0, %v1749_v59  ;;  %vm1587_vm4 = vcmp.ge.f32.partialorder %v3896_v53, 0.0  ;;  %v1619_v52 = vmul.f32 0.2, %v3896_v53 }
 0x1fd   : > { %2561 = vst.msk [vmem:[%s3691_s27 + $0x1c0] sm:$0xff] %vm204_vm0, %v1753_v39  ;;  %3245 = vmatmul.mubr.msk.f32.gmra.mrb[30].mxu0 %vm204_vm0, %v3845_v27  ;;  %3481 = vmatprep.subr.msk.bf16.mxu1 %vm3715_vm14, %v3479_v47  ;;  %v1647_v48 = vsel %vm1583_vm3, %v3886_v51, %v1615_v61  ;;  %v3485_v20 = vpack.c.bf16 %v4038_v38, %v1749_v59  ;;  %v1712_v0 = vmin.f32 %v1680_v63, 1.0 }
 0x1fe   : > { %3269 = vmatprep.mubr.msk.f32.mxu0 %vm204_vm0, %v3937_v3  ;;  %v1716_v4 = vmin.f32 %v1684_v41, 1.0  ;;  %v1679_v27 = vmax.f32 %v1647_v48, 0.0  ;;  %v3497_v9 = vpack.c.bf16 %v4042_v58, %v1753_v39  ;;  %v1651_v51 = vsel %vm1587_vm4, %v3896_v53, %v1619_v52 }
 0x1ff   : > { %3259 = vmatmul.mubr.msk.f32.gmra.mrb[30].mxu1 %vm204_vm0, %v3849_v28  ;;  %v1752_v10 = vsel %vm3680_vm6, 1.0, %v1712_v0  ;;  %v1683_v14 = vmax.f32 %v1651_v51, 0.0 }
 0x200   : > { %3283 = vmatprep.mubr.msk.f32.mxu1 %vm204_vm0, %v3955_v7  ;;  %v1756_v3 = vsel %vm3680_vm6, 1.0, %v1716_v4  ;;  %v1711_v12 = vmin.f32 %v1679_v27, 1.0  ;;  %2560 = vst.msk [vmem:[%s3691_s27 + $0x198] sm:$0xff] %vm204_vm0, %v1752_v10 }
 0x201   : > { %2564 = vst.msk [vmem:[%s3691_s27 + $0x1d8] sm:$0xff] %vm204_vm0, %v1756_v3  ;;  %3472 = vmatpush3.bf16.xpose.msk.msra.mxu0 %vm3715_vm14, %v3467_v46  ;;  %v1715_v53 = vmin.f32 %v1683_v14, 1.0 }
 0x202   : > { %v1751_v28 = vsel %vm3693_vm11, 1.0, %v1711_v12  ;;  %3487 = vmatprep.subr.msk.bf16.mxu0 %vm3715_vm14, %v3485_v20 }
 0x203   : > { %2559 = vst.msk [vmem:[%s3691_s27 + $0x190] sm:$0xff] %vm204_vm0, %v1751_v28  ;;  %v3491_v7 = vpack.c.bf16 %v1752_v10, %v1751_v28  ;;  %v1755_v21 = vsel %vm3693_vm11, 1.0, %v1715_v53 }
 0x204   : > { %3484 = vmatpush3.bf16.xpose.msk.msra.mxu1 %vm3715_vm14, %v3479_v47  ;;  %2563 = vst.msk [vmem:[%s3691_s27 + $0x1d0] sm:$0xff] %vm204_vm0, %v1755_v21  ;;  %v3503_v5 = vpack.c.bf16 %v1756_v3, %v1755_v21 }
 0x205   : > { %3499 = vmatprep.subr.msk.bf16.mxu1 %vm3715_vm14, %v3497_v9 }
 0x208   : > { %3270 = vmatmul.mubr.msk.f32.vlgmr.msra.gmra.mrb[32].mxu0 %vm204_vm0, %v3918_v2 }
 0x209   : > { %3272 = vmatprep.mubr.msk.f32.mxu0 %vm204_vm0, %v4006_v37  ;;  %3490 = vmatpush3.bf16.xpose.msk.msra.mxu0 %vm3715_vm14, %v3485_v20 }
 0x20a   : > { %3493 = vmatprep.subr.msk.bf16.mxu0 %vm3715_vm14, %v3491_v7 }
 0x20b   : > { %3284 = vmatmul.mubr.msk.f32.vlgmr.msra.gmra.mrb[32].mxu1 %vm204_vm0, %v3933_v1 }
 0x20c   : > { %3286 = vmatprep.mubr.msk.f32.mxu1 %vm204_vm0, %v4010_v40  ;;  %3502 = vmatpush3.bf16.xpose.msk.msra.mxu1 %vm3715_vm14, %v3497_v9 }
 0x20d   : > { %3273 = vmatmul.mubr.msk.f32.gmra.mrb[34].mxu0 %vm204_vm0, %v3975_v8  ;;  %3505 = vmatprep.subr.msk.bf16.mxu1 %vm3715_vm14, %v3503_v5 }
 0x20e   : > { %3297 = vmatprep.mubr.msk.f32.mxu0 %vm204_vm0, %v1749_v59 }
 0x20f   : > { %3287 = vmatmul.mubr.msk.f32.gmra.mrb[34].mxu1 %vm204_vm0, %v3990_v23 }
 0x210   : > { %3311 = vmatprep.mubr.msk.f32.mxu1 %vm204_vm0, %v1753_v39 }
 0x211   : > { %3496 = vmatpush3.bf16.xpose.msk.msra.mxu0 %vm3715_vm14, %v3491_v7 }
 0x214   : > { %3508 = vmatpush3.bf16.xpose.msk.msra.mxu1 %vm3715_vm14, %v3503_v5 }
 0x218   : > { %3298 = vmatmul.mubr.msk.f32.vlgmr.msra.gmra.mrb[36].mxu0 %vm204_vm0, %v4038_v38 }
 0x219   : > { %3300 = vmatprep.mubr.msk.f32.mxu0 %vm204_vm0, %v1751_v28 }
 0x21b   : > { %3312 = vmatmul.mubr.msk.f32.vlgmr.msra.gmra.mrb[36].mxu1 %vm204_vm0, %v4042_v58 }
 0x21c   : > { %3314 = vmatprep.mubr.msk.f32.mxu1 %vm204_vm0, %v1755_v21  ;;  %3301 = vmatmul.mubr.msk.f32.gmra.mrb[38].mxu0 %vm204_vm0, %v1752_v10 }
 0x21f   : > { %3315 = vmatmul.mubr.msk.f32.gmra.mrb[38].mxu1 %vm204_vm0, %v1756_v3 }
 0x2bb   : > { %v3215_v2 = vpop.f32.mrb[24].mxu0 }
 0x2bc   : > { %v2566_v13 = vand.u32 2147483647, %v3215_v2  ;;  %v1835_v1 = vpop.f32.mrb[25].mxu0 }
 0x2bd   : > { %v3229_v15 = vpop.f32.mrb[24].mxu1  ;;  %v2565_v16 = vand.u32 2147483647, %v1835_v1 }
 0x2be   : > { %v2598_v8 = vsel %vm3675_vm2, 1.0, %v2566_v13  ;;  %v2570_v17 = vand.u32 2147483647, %v3229_v15  ;;  %v1932_v18 = vpop.f32.mrb[25].mxu1 }
 0x2bf   : > { %2843 = vst.msk [vmem:[%s3691_s27 + $0x28] sm:$0xff] %vm204_vm0, %v2598_v8  ;;  %v2597_v19 = vsel %vm3684_vm7, 1.0, %v2565_v16  ;;  %v2569_v6 = vand.u32 2147483647, %v1932_v18  ;;  %v3218_v11 = vpop.f32.mrb[26].mxu0 }
 0x2c0   : > { %v2602_v23 = vsel %vm3675_vm2, 1.0, %v2570_v17  ;;  %2842 = vst.msk [vmem:[%s3691_s27 + $0x20] sm:$0xff] %vm204_vm0, %v2597_v19  ;;  %v2568_v24 = vand.u32 2147483647, %v3218_v11  ;;  %v1845_v29 = vpop.f32.mrb[27].mxu0 }
 0x2c1   : > { %2847 = vst.msk [vmem:[%s3691_s27 + $0x68] sm:$0xff] %vm204_vm0, %v2602_v23  ;;  %v2601_v30 = vsel %vm3684_vm7, 1.0, %v2569_v6  ;;  %v3232_v32 = vpop.f32.mrb[26].mxu1  ;;  %v2567_v33 = vand.u32 2147483647, %v1845_v29 }
 0x2c2   : > { %2846 = vst.msk [vmem:[%s3691_s27 + $0x60] sm:$0xff] %vm204_vm0, %v2601_v30  ;;  %v2600_v35 = vsel %vm3680_vm6, 1.0, %v2568_v24  ;;  %v2572_v37 = vand.u32 2147483647, %v3232_v32  ;;  %v1942_v40 = vpop.f32.mrb[27].mxu1 }
 0x2c3   : > { %2845 = vst.msk [vmem:[%s3691_s27 + $0x38] sm:$0xff] %vm204_vm0, %v2600_v35  ;;  %v2599_v43 = vsel %vm3693_vm11, 1.0, %v2567_v33  ;;  %v2571_v45 = vand.u32 2147483647, %v1942_v40 }
 0x2c4   : > { %v2604_v22 = vsel %vm3680_vm6, 1.0, %v2572_v37  ;;  %2844 = vst.msk [vmem:[%s3691_s27 + $0x30] sm:$0xff] %vm204_vm0, %v2599_v43 }
 0x2c5   : > { %2849 = vst.msk [vmem:[%s3691_s27 + $0x78] sm:$0xff] %vm204_vm0, %v2604_v22  ;;  %v2603_v25 = vsel %vm3693_vm11, 1.0, %v2571_v45 }
 0x2c6   : > { %2848 = vst.msk [vmem:[%s3691_s27 + $0x70] sm:$0xff] %vm204_vm0, %v2603_v25 }
 0x2cb   : > { %v3243_v46 = vpop.f32.mrb[28].mxu0 }
 0x2cc   : > { %v2574_v47 = vand.u32 2147483647, %v3243_v46  ;;  %v2029_v62 = vpop.f32.mrb[29].mxu0 }
 0x2cd   : > { %v2573_v50 = vand.u32 2147483647, %v2029_v62 }
 0x2ce   : > { %v3257_v49 = vpop.f32.mrb[28].mxu1  ;;  %v2606_v54 = vsel %vm3675_vm2, 1.0, %v2574_v47 }
 0x2cf   : > { %v2578_v26 = vand.u32 2147483647, %v3257_v49  ;;  %v2126_v31 = vpop.f32.mrb[29].mxu1  ;;  %2851 = vst.msk [vmem:[%s3691_s27 + $0xa8] sm:$0xff] %vm204_vm0, %v2606_v54  ;;  %v2605_v38 = vsel %vm3684_vm7, 1.0, %v2573_v50 }
 0x2d0   : > { %v2577_v58 = vand.u32 2147483647, %v2126_v31  ;;  %v3246_v56 = vpop.f32.mrb[30].mxu0  ;;  %2850 = vst.msk [vmem:[%s3691_s27 + $0xa0] sm:$0xff] %vm204_vm0, %v2605_v38 }
 0x2d1   : > { %v2610_v55 = vsel %vm3675_vm2, 1.0, %v2578_v26  ;;  %v2576_v36 = vand.u32 2147483647, %v3246_v56  ;;  %v2039_v57 = vpop.f32.mrb[31].mxu0 }
 0x2d2   : > { %2855 = vst.msk [vmem:[%s3691_s27 + $0xe8] sm:$0xff] %vm204_vm0, %v2610_v55  ;;  %v2609_v61 = vsel %vm3684_vm7, 1.0, %v2577_v58  ;;  %v3260_v59 = vpop.f32.mrb[30].mxu1  ;;  %v2575_v39 = vand.u32 2147483647, %v2039_v57 }
 0x2d3   : > { %2854 = vst.msk [vmem:[%s3691_s27 + $0xe0] sm:$0xff] %vm204_vm0, %v2609_v61  ;;  %v2608_v63 = vsel %vm3680_vm6, 1.0, %v2576_v36  ;;  %v2580_v41 = vand.u32 2147483647, %v3260_v59  ;;  %v2136_v48 = vpop.f32.mrb[31].mxu1 }
 0x2d4   : > { %2853 = vst.msk [vmem:[%s3691_s27 + $0xb8] sm:$0xff] %vm204_vm0, %v2608_v63  ;;  %v2607_v52 = vsel %vm3693_vm11, 1.0, %v2575_v39  ;;  %v2579_v20 = vand.u32 2147483647, %v2136_v48 }
 0x2d5   : > { %v2612_v0 = vsel %vm3680_vm6, 1.0, %v2580_v41  ;;  %2852 = vst.msk [vmem:[%s3691_s27 + $0xb0] sm:$0xff] %vm204_vm0, %v2607_v52 }
 0x2d6   : > { %2857 = vst.msk [vmem:[%s3691_s27 + $0xf8] sm:$0xff] %vm204_vm0, %v2612_v0  ;;  %v2611_v4 = vsel %vm3693_vm11, 1.0, %v2579_v20 }
 0x2d7   : > { %2856 = vst.msk [vmem:[%s3691_s27 + $0xf0] sm:$0xff] %vm204_vm0, %v2611_v4 }
 0x2db   : > { %v3271_v27 = vpop.f32.mrb[32].mxu0 }
 0x2dc   : > { %v2582_v9 = vand.u32 2147483647, %v3271_v27  ;;  %v2223_v51 = vpop.f32.mrb[33].mxu0 }
 0x2dd   : > { %v2581_v3 = vand.u32 2147483647, %v2223_v51 }
 0x2de   : > { %v3285_v10 = vpop.f32.mrb[32].mxu1  ;;  %v2614_v12 = vsel %vm3675_vm2, 1.0, %v2582_v9 }
 0x2df   : > { %v2586_v14 = vand.u32 2147483647, %v3285_v10  ;;  %v2320_v28 = vpop.f32.mrb[33].mxu1  ;;  %2859 = vst.msk [vmem:[%s3691_s27 + $0x128] sm:$0xff] %vm204_vm0, %v2614_v12  ;;  %v2613_v53 = vsel %vm3684_vm7, 1.0, %v2581_v3 }
 0x2e0   : > { %v2585_v7 = vand.u32 2147483647, %v2320_v28  ;;  %v3274_v21 = vpop.f32.mrb[34].mxu0  ;;  %2858 = vst.msk [vmem:[%s3691_s27 + $0x120] sm:$0xff] %vm204_vm0, %v2613_v53 }
 0x2e1   : > { %v2618_v5 = vsel %vm3675_vm2, 1.0, %v2586_v14  ;;  %v2584_v2 = vand.u32 2147483647, %v3274_v21  ;;  %v2233_v13 = vpop.f32.mrb[35].mxu0 }
 0x2e2   : > { %2863 = vst.msk [vmem:[%s3691_s27 + $0x168] sm:$0xff] %vm204_vm0, %v2618_v5  ;;  %v2617_v1 = vsel %vm3684_vm7, 1.0, %v2585_v7  ;;  %v3288_v15 = vpop.f32.mrb[34].mxu1  ;;  %v2583_v16 = vand.u32 2147483647, %v2233_v13 }
 0x2e3   : > { %2862 = vst.msk [vmem:[%s3691_s27 + $0x160] sm:$0xff] %vm204_vm0, %v2617_v1  ;;  %v2616_v8 = vsel %vm3680_vm6, 1.0, %v2584_v2  ;;  %v2588_v17 = vand.u32 2147483647, %v3288_v15  ;;  %v2330_v18 = vpop.f32.mrb[35].mxu1 }
 0x2e4   : > { %2861 = vst.msk [vmem:[%s3691_s27 + $0x138] sm:$0xff] %vm204_vm0, %v2616_v8  ;;  %v2615_v19 = vsel %vm3693_vm11, 1.0, %v2583_v16  ;;  %v2587_v6 = vand.u32 2147483647, %v2330_v18 }
 0x2e5   : > { %v2620_v11 = vsel %vm3680_vm6, 1.0, %v2588_v17  ;;  %2860 = vst.msk [vmem:[%s3691_s27 + $0x130] sm:$0xff] %vm204_vm0, %v2615_v19 }
 0x2e6   : > { %2865 = vst.msk [vmem:[%s3691_s27 + $0x178] sm:$0xff] %vm204_vm0, %v2620_v11  ;;  %v2619_v23 = vsel %vm3693_vm11, 1.0, %v2587_v6 }
 0x2e7   : > { %2864 = vst.msk [vmem:[%s3691_s27 + $0x170] sm:$0xff] %vm204_vm0, %v2619_v23 }
 0x2eb   : > { %v3299_v24 = vpop.f32.mrb[36].mxu0 }
 0x2ec   : > { %v2590_v29 = vand.u32 2147483647, %v3299_v24  ;;  %v2417_v30 = vpop.f32.mrb[37].mxu0 }
 0x2ed   : > { %v2589_v33 = vand.u32 2147483647, %v2417_v30 }
 0x2ee   : > { %v3313_v32 = vpop.f32.mrb[36].mxu1  ;;  %v2622_v35 = vsel %vm3675_vm2, 1.0, %v2590_v29 }
 0x2ef   : > { %v2594_v37 = vand.u32 2147483647, %v3313_v32  ;;  %v2514_v40 = vpop.f32.mrb[37].mxu1  ;;  %2867 = vst.msk [vmem:[%s3691_s27 + $0x1a8] sm:$0xff] %vm204_vm0, %v2622_v35  ;;  %v2621_v43 = vsel %vm3684_vm7, 1.0, %v2589_v33  ;;  %v3302_v22 = vpop.f32.mrb[38].mxu0 }
 0x2f0   : > { %v2593_v45 = vand.u32 2147483647, %v2514_v40  ;;  %2866 = vst.msk [vmem:[%s3691_s27 + $0x1a0] sm:$0xff] %vm204_vm0, %v2621_v43  ;;  %v2592_v46 = vand.u32 2147483647, %v3302_v22  ;;  %v2427_v47 = vpop.f32.mrb[39].mxu0 }
 0x2f1   : > { %v2626_v25 = vsel %vm3675_vm2, 1.0, %v2594_v37  ;;  %v2591_v50 = vand.u32 2147483647, %v2427_v47 }
 0x2f2   : > { %2871 = vst.msk [vmem:[%s3691_s27 + $0x1e8] sm:$0xff] %vm204_vm0, %v2626_v25  ;;  %v2625_v62 = vsel %vm3684_vm7, 1.0, %v2593_v45  ;;  %v3316_v49 = vpop.f32.mrb[38].mxu1  ;;  %v2624_v34 = vsel %vm3680_vm6, 1.0, %v2592_v46 }
 0x2f3   : > { %2870 = vst.msk [vmem:[%s3691_s27 + $0x1e0] sm:$0xff] %vm204_vm0, %v2625_v62  ;;  %v2596_v54 = vand.u32 2147483647, %v3316_v49  ;;  %v2524_v26 = vpop.f32.mrb[39].mxu1  ;;  %2869 = vst.msk [vmem:[%s3691_s27 + $0x1b8] sm:$0xff] %vm204_vm0, %v2624_v34  ;;  %v2623_v31 = vsel %vm3693_vm11, 1.0, %v2591_v50 }
 0x2f4   : > { %v2595_v38 = vand.u32 2147483647, %v2524_v26  ;;  %2868 = vst.msk [vmem:[%s3691_s27 + $0x1b0] sm:$0xff] %vm204_vm0, %v2623_v31 }
 0x2f5   : > { %v2628_v58 = vsel %vm3680_vm6, 1.0, %v2596_v54 }
 0x2f6   : > { %2873 = vst.msk [vmem:[%s3691_s27 + $0x1f8] sm:$0xff] %vm204_vm0, %v2628_v58  ;;  %v2627_v44 = vsel %vm3693_vm11, 1.0, %v2595_v38 }
 0x2f7   : > { %2872 = vst.msk [vmem:[%s3691_s27 + $0x1f0] sm:$0xff] %vm204_vm0, %v2627_v44 }
 0x2f8 PF: > { %s12_s9 = sadd.s32 1, %s3524_s9  }
 0x2f9   : > { %p9_p4 = scmp.ge.s32.totalorder %s12_s9, 4  }
 0x2fb   :  { %11 = sbr.rel (!%p9_p4) target bundleno = 1 (0x1), region = 59 }

</bundles_post_ra>
